<compile_context>
chip_gen: v5e
topology: v5e:2x2
jax: 0.10.0
libtpu: 0.0.40
codegen_flags: <defaults>
</compile_context>

<pallas_src>
import functools
import math

import jax
import jax.numpy as jnp
from jax.experimental import pallas as pl
from jax.experimental.pallas import tpu as pltpu


_EPS = 1e-5
_VMEM_LIMIT_BYTES = 48 * 1024 * 1024   # explicit: > v5e 16 MiB scoped default, < v7x 64 MiB physical
_MAX_PACKED_LANES = 768                # lcm(C,128) above this -> generic row kernel


def _cdiv(a, b):
    return -(-a // b)


def _round_up(a, m):
    return _cdiv(a, m) * m


def _sublane(itemsize):
    # native sublane tiling: (8,128) f32, (16,128) bf16/f16, (32,128) 8-bit
    if itemsize >= 4:
        return 8
    if itemsize == 2:
        return 16
    return 32


def _pick_tile(rows, lane_width, itemsize, block_bytes):
    """Row tile from a per-block byte budget; prefer >= 2 grid steps."""
    sub = _sublane(itemsize)
    lanes = _round_up(lane_width, 128)          # VMEM pads the lane axis to 128
    max_tile = max(sub, (block_bytes // (lanes * itemsize)) // sub * sub)
    tile = min(_round_up(rows, sub), max_tile)
    if tile >= rows and rows > sub:
        # Split into >= 2 blocks so the "parallel" grid axis can shard across
        # v7x's two TensorCores (no effect on single-TC v5e/v6e).
        tile = _round_up(_cdiv(rows, 2), sub)
    return tile


def _dot3(v, m):
    """v @ m with ~f32 accuracy via three plain bf16 MXU passes (manual 'HIGH').

    `m` is an exact 0/1 (or power-of-two) bf16 matrix, so all error comes from
    the 3-term bf16 split of `v` (~2^-27 relative) plus f32 accumulation.
    """
    v0 = v.astype(jnp.bfloat16)
    acc = jnp.dot(v0, m, preferred_element_type=jnp.float32)
    r = v - v0.astype(jnp.float32)
    v1 = r.astype(jnp.bfloat16)
    acc = acc + jnp.dot(v1, m, preferred_element_type=jnp.float32)
    v2 = (r - v1.astype(jnp.float32)).astype(jnp.bfloat16)
    return acc + jnp.dot(v2, m, preferred_element_type=jnp.float32)


def _ln_packed_kernel(x_ref, wb_ref, seg_ref, bcast_ref, o_ref, *, inv_c):
    # x_ref:     (TILE, Cp)  activations; Cp = P*C lanes (multiple of 128)
    # wb_ref:    (2, Cp) f32 row 0 = weight tiled P times, row 1 = bias tiled
    # seg_ref:   (Cp, P) bf16 0/1 segment-reduce matrix
    # bcast_ref: (P, Cp) bf16 0/1 segment-broadcast matrix
    x = x_ref[...].astype(jnp.float32)
    s = seg_ref[...]
    bc = bcast_ref[...]
    # Per-logical-row mean: skinny reduce + broadcast on the (otherwise idle) MXU.
    mu_seg = _dot3(x, s) * inv_c                        # (TILE, P)
    mu = _dot3(mu_seg, bc)                              # (TILE, Cp)
    d = x - mu
    # Centered variance (no E[x^2]-mu^2 cancellation), identical MXU cost.
    var_seg = _dot3(d * d, s) * inv_c                   # (TILE, P)
    inv_seg = jax.lax.rsqrt(var_seg + _EPS)
    inv = _dot3(inv_seg, bc)                            # (TILE, Cp)
    wb = wb_ref[...]
    o_ref[...] = (d * inv * wb[0:1, :] + wb[1:2, :]).astype(o_ref.dtype)


def _ln_rows_kernel(x_ref, wb_ref, o_ref):
    # Generic fallback: one logical row per vreg row (lane-dense when C % 128 == 0).
    x = x_ref[...].astype(jnp.float32)
    mu = jnp.mean(x, axis=-1, keepdims=True)
    d = x - mu
    var = jnp.mean(d * d, axis=-1, keepdims=True)
    inv = jax.lax.rsqrt(var + _EPS)
    wb = wb_ref[...]
    o_ref[...] = (d * inv * wb[0:1, :] + wb[1:2, :]).astype(o_ref.dtype)


def with_bias_layernorm(x, weight, bias, *, block_bytes=2 * 1024 * 1024):
    """y = (x - mean) / sqrt(var + 1e-5) * weight + bias over the last axis."""
    orig_shape = x.shape
    C = orig_shape[-1]
    dt = x.dtype
    isize = jnp.dtype(dt).itemsize
    x2d = x.reshape(-1, C)
    N = x2d.shape[0]
    wb = jnp.stack([weight.astype(jnp.float32), bias.astype(jnp.float32)], axis=0)

    Cp = (C * 128) // math.gcd(C, 128)      # lcm(C, 128)
    P = Cp // C                             # logical rows packed per lane row

    cparams = pltpu.CompilerParams(
        dimension_semantics=("parallel",),
        vmem_limit_bytes=_VMEM_LIMIT_BYTES)

    if P >= 2 and Cp <= _MAX_PACKED_LANES:
        # ---- lane-packed path (covers Restormer's C = 48 / 96 / 192) ----
        rem = (-N) % P
        if rem:
            # Tiny tail pad (< P rows).  Restormer row counts (B*H*W) are normally
            # multiples of P, so this copy is skipped; no tile-multiple padding ever.
            x2d = jnp.pad(x2d, ((0, rem), (0, 0)))
        Np = (N + rem) // P
        x_packed = x2d.reshape(Np, Cp)                  # free row-major reinterpretation
        wb_packed = jnp.tile(wb, (1, P))                # (2, Cp)
        lane_seg = jnp.arange(Cp) // C                  # segment id of each lane
        seg_ids = jnp.arange(P)
        seg_m = (lane_seg[:, None] == seg_ids[None, :]).astype(jnp.bfloat16)    # (Cp, P)
        bcast_m = (seg_ids[:, None] == lane_seg[None, :]).astype(jnp.bfloat16)  # (P, Cp)

        tile = _pick_tile(Np, Cp, isize, block_bytes)
        grid = (_cdiv(Np, tile),)                       # boundary block masked by Pallas

        out = pl.pallas_call(
            functools.partial(_ln_packed_kernel, inv_c=1.0 / C),
            out_shape=jax.ShapeDtypeStruct((Np, Cp), dt),
            grid_spec=pltpu.PrefetchScalarGridSpec(
                num_scalar_prefetch=0,
                grid=grid,
                in_specs=[
                    pl.BlockSpec((tile, Cp), lambda i: (i, 0)),
                    pl.BlockSpec((2, Cp), lambda i: (0, 0)),    # constants: fetched once
                    pl.BlockSpec((Cp, P), lambda i: (0, 0)),
                    pl.BlockSpec((P, Cp), lambda i: (0, 0)),
                ],
                out_specs=pl.BlockSpec((tile, Cp), lambda i: (i, 0)),
            ),
            compiler_params=cparams,
        )(x_packed, wb_packed, seg_m, bcast_m)
        out = out.reshape(Np * P, C)
        if rem:
            out = out[:N]
    else:
        # ---- generic fallback: C stays on the lane axis ----
        tile = _pick_tile(N, C, isize, block_bytes)
        grid = (_cdiv(N, tile),)
        out = pl.pallas_call(
            _ln_rows_kernel,
            out_shape=jax.ShapeDtypeStruct((N, C), dt),
            grid_spec=pltpu.PrefetchScalarGridSpec(
                num_scalar_prefetch=0,
                grid=grid,
                in_specs=[
                    pl.BlockSpec((tile, C), lambda i: (i, 0)),
                    pl.BlockSpec((2, C), lambda i: (0, 0)),
                ],
                out_specs=pl.BlockSpec((tile, C), lambda i: (i, 0)),
            ),
            compiler_params=cparams,
        )(x2d, wb)

    return out.reshape(orig_shape)


def reference_layernorm(x, weight, bias):
    mu = jnp.mean(x, axis=-1, keepdims=True)
    sigma = jnp.mean((x - mu) ** 2, axis=-1, keepdims=True)
    return (x - mu) / jnp.sqrt(sigma + _EPS) * weight + bias


if __name__ == "__main__":
    key = jax.random.PRNGKey(0)
    k1, k2, k3, k4, k5 = jax.random.split(key, 5)

    # 1) encoder_level1 LayerNorm of ExpertRestore: dim = 48, small spatial.
    #    Packed path: Cp = lcm(48,128) = 384, P = 8, aligned rows (no pad at all).
    B, H, W, C1 = 2, 16, 16, 48
    x1 = jax.random.normal(k1, (B, H * W, C1), dtype=jnp.float32)
    w1 = jnp.ones((C1,), dtype=jnp.float32)     # module init: weight=ones, bias=zeros
    b1 = jnp.zeros((C1,), dtype=jnp.float32)
    y1 = jax.block_until_ready(with_bias_layernorm(x1, w1, b1))
    assert y1.shape == x1.shape
    assert jnp.allclose(y1, reference_layernorm(x1, w1, b1), atol=1e-5, rtol=1e-5), \
        "packed path (C=48) mismatch"

    # 2) decoder-level dim = 96, non-aligned row count (exercises the small tail
    #    pad + masked boundary block) and a non-zero mean (centered variance).
    C2 = 96
    x2 = 1.5 + jax.random.normal(k2, (1, 101, C2), dtype=jnp.float32)
    w2 = 1.0 + 0.1 * jax.random.normal(k3, (C2,), dtype=jnp.float32)
    b2 = 0.1 * jax.random.normal(k4, (C2,), dtype=jnp.float32)
    y2 = jax.block_until_ready(with_bias_layernorm(x2, w2, b2))
    assert jnp.allclose(y2, reference_layernorm(x2, w2, b2), atol=1e-5, rtol=1e-5), \
        "packed path (C=96, ragged rows) mismatch"

    # 3) generic fallback path (C whose lcm with 128 is too large to pack).
    C3 = 100
    x3 = jax.random.normal(k5, (1, 64, C3), dtype=jnp.float32)
    w3 = jnp.ones((C3,), dtype=jnp.float32)
    b3 = jnp.zeros((C3,), dtype=jnp.float32)
    y3 = jax.block_until_ready(with_bias_layernorm(x3, w3, b3))
    assert jnp.allclose(y3, reference_layernorm(x3, w3, b3), atol=1e-5, rtol=1e-5), \
        "row fallback path mismatch"

    # TODO(synk): only WithBias_LayerNorm is implemented as a Pallas kernel here;
    # the surrounding convs / FFT attention / MHA of ExpertRestore are out of scope.
    print("KERNEL_OK")
</pallas_src>

<mosaic_0001>
module attributes {stable_mosaic.version = 11 : i64} {
  func.func @_ln_packed_kernel(%arg0: i32, %arg1: memref<32x384xf32, #tpu.memory_space<vmem>>, %arg2: memref<2x384xf32, #tpu.memory_space<vmem>>, %arg3: memref<384x8xbf16, #tpu.memory_space<vmem>>, %arg4: memref<8x384xbf16, #tpu.memory_space<vmem>>, %arg5: memref<32x384xf32, #tpu.memory_space<vmem>>) attributes {dimension_semantics = [#tpu.dimension_semantics<parallel>], iteration_bounds = array<i64: 2>, scalar_prefetch = 0 : i64, scratch_operands = 0 : i64, tpu.core_type = #tpu.core_type<tc>, window_params = [{transform_indices = @transform_0, window_bounds = array<i64: 32, 384>}, {pipeline_mode = #tpu.pipeline_mode<synchronous>, transform_indices = @transform_1, window_bounds = array<i64: 2, 384>}, {pipeline_mode = #tpu.pipeline_mode<synchronous>, transform_indices = @transform_2, window_bounds = array<i64: 384, 8>}, {pipeline_mode = #tpu.pipeline_mode<synchronous>, transform_indices = @transform_3, window_bounds = array<i64: 8, 384>}, {transform_indices = @transform_4, window_bounds = array<i64: 32, 384>}]} {
    %c0 = arith.constant 0 : index
    %c0_0 = arith.constant 0 : index
    %0 = vector.load %arg1[%c0, %c0_0] : memref<32x384xf32, #tpu.memory_space<vmem>>, vector<32x384xf32>
    %c0_1 = arith.constant 0 : index
    %c0_2 = arith.constant 0 : index
    %1 = vector.load %arg3[%c0_1, %c0_2] : memref<384x8xbf16, #tpu.memory_space<vmem>>, vector<384x8xbf16>
    %c0_3 = arith.constant 0 : index
    %c0_4 = arith.constant 0 : index
    %2 = vector.load %arg4[%c0_3, %c0_4] : memref<8x384xbf16, #tpu.memory_space<vmem>>, vector<8x384xbf16>
    %3 = arith.truncf %0 : vector<32x384xf32> to vector<32x384xbf16>
    %cst = arith.constant dense<0.000000e+00> : vector<32x8xf32>
    %4 = tpu.matmul %3, %1, %cst {dimension_numbers = #tpu.dot_dimension_numbers<[1], [0], [0], [1], [0, 0, 1, 1], [], []>} : vector<32x384xbf16>, vector<384x8xbf16>, vector<32x8xf32> -> vector<32x8xf32>
    %5 = arith.extf %3 : vector<32x384xbf16> to vector<32x384xf32>
    %6 = arith.subf %0, %5 : vector<32x384xf32>
    %7 = arith.truncf %6 : vector<32x384xf32> to vector<32x384xbf16>
    %cst_5 = arith.constant dense<0.000000e+00> : vector<32x8xf32>
    %8 = tpu.matmul %7, %1, %cst_5 {dimension_numbers = #tpu.dot_dimension_numbers<[1], [0], [0], [1], [0, 0, 1, 1], [], []>} : vector<32x384xbf16>, vector<384x8xbf16>, vector<32x8xf32> -> vector<32x8xf32>
    %9 = arith.addf %4, %8 : vector<32x8xf32>
    %10 = arith.extf %7 : vector<32x384xbf16> to vector<32x384xf32>
    %11 = arith.subf %6, %10 : vector<32x384xf32>
    %12 = arith.truncf %11 : vector<32x384xf32> to vector<32x384xbf16>
    %cst_6 = arith.constant dense<0.000000e+00> : vector<32x8xf32>
    %13 = tpu.matmul %12, %1, %cst_6 {dimension_numbers = #tpu.dot_dimension_numbers<[1], [0], [0], [1], [0, 0, 1, 1], [], []>} : vector<32x384xbf16>, vector<384x8xbf16>, vector<32x8xf32> -> vector<32x8xf32>
    %14 = arith.addf %9, %13 : vector<32x8xf32>
    %cst_7 = arith.constant 0.020833334 : f32
    %15 = vector.broadcast %cst_7 : f32 to vector<32x8xf32>
    %16 = arith.mulf %14, %15 : vector<32x8xf32>
    %17 = arith.truncf %16 : vector<32x8xf32> to vector<32x8xbf16>
    %cst_8 = arith.constant dense<0.000000e+00> : vector<32x384xf32>
    %18 = tpu.matmul %17, %2, %cst_8 {dimension_numbers = #tpu.dot_dimension_numbers<[1], [0], [0], [1], [0, 0, 1, 1], [], []>} : vector<32x8xbf16>, vector<8x384xbf16>, vector<32x384xf32> -> vector<32x384xf32>
    %19 = arith.extf %17 : vector<32x8xbf16> to vector<32x8xf32>
    %20 = arith.subf %16, %19 : vector<32x8xf32>
    %21 = arith.truncf %20 : vector<32x8xf32> to vector<32x8xbf16>
    %cst_9 = arith.constant dense<0.000000e+00> : vector<32x384xf32>
    %22 = tpu.matmul %21, %2, %cst_9 {dimension_numbers = #tpu.dot_dimension_numbers<[1], [0], [0], [1], [0, 0, 1, 1], [], []>} : vector<32x8xbf16>, vector<8x384xbf16>, vector<32x384xf32> -> vector<32x384xf32>
    %23 = arith.addf %18, %22 : vector<32x384xf32>
    %24 = arith.extf %21 : vector<32x8xbf16> to vector<32x8xf32>
    %25 = arith.subf %20, %24 : vector<32x8xf32>
    %26 = arith.truncf %25 : vector<32x8xf32> to vector<32x8xbf16>
    %cst_10 = arith.constant dense<0.000000e+00> : vector<32x384xf32>
    %27 = tpu.matmul %26, %2, %cst_10 {dimension_numbers = #tpu.dot_dimension_numbers<[1], [0], [0], [1], [0, 0, 1, 1], [], []>} : vector<32x8xbf16>, vector<8x384xbf16>, vector<32x384xf32> -> vector<32x384xf32>
    %28 = arith.addf %23, %27 : vector<32x384xf32>
    %29 = arith.subf %0, %28 : vector<32x384xf32>
    %30 = arith.mulf %29, %29 : vector<32x384xf32>
    %31 = arith.truncf %30 : vector<32x384xf32> to vector<32x384xbf16>
    %cst_11 = arith.constant dense<0.000000e+00> : vector<32x8xf32>
    %32 = tpu.matmul %31, %1, %cst_11 {dimension_numbers = #tpu.dot_dimension_numbers<[1], [0], [0], [1], [0, 0, 1, 1], [], []>} : vector<32x384xbf16>, vector<384x8xbf16>, vector<32x8xf32> -> vector<32x8xf32>
    %33 = arith.extf %31 : vector<32x384xbf16> to vector<32x384xf32>
    %34 = arith.subf %30, %33 : vector<32x384xf32>
    %35 = arith.truncf %34 : vector<32x384xf32> to vector<32x384xbf16>
    %cst_12 = arith.constant dense<0.000000e+00> : vector<32x8xf32>
    %36 = tpu.matmul %35, %1, %cst_12 {dimension_numbers = #tpu.dot_dimension_numbers<[1], [0], [0], [1], [0, 0, 1, 1], [], []>} : vector<32x384xbf16>, vector<384x8xbf16>, vector<32x8xf32> -> vector<32x8xf32>
    %37 = arith.addf %32, %36 : vector<32x8xf32>
    %38 = arith.extf %35 : vector<32x384xbf16> to vector<32x384xf32>
    %39 = arith.subf %34, %38 : vector<32x384xf32>
    %40 = arith.truncf %39 : vector<32x384xf32> to vector<32x384xbf16>
    %cst_13 = arith.constant dense<0.000000e+00> : vector<32x8xf32>
    %41 = tpu.matmul %40, %1, %cst_13 {dimension_numbers = #tpu.dot_dimension_numbers<[1], [0], [0], [1], [0, 0, 1, 1], [], []>} : vector<32x384xbf16>, vector<384x8xbf16>, vector<32x8xf32> -> vector<32x8xf32>
    %42 = arith.addf %37, %41 : vector<32x8xf32>
    %cst_14 = arith.constant 0.020833334 : f32
    %43 = vector.broadcast %cst_14 : f32 to vector<32x8xf32>
    %44 = arith.mulf %42, %43 : vector<32x8xf32>
    %cst_15 = arith.constant 9.99999974E-6 : f32
    %45 = vector.broadcast %cst_15 : f32 to vector<32x8xf32>
    %46 = arith.addf %44, %45 : vector<32x8xf32>
    %47 = math.rsqrt %46 : vector<32x8xf32>
    %48 = arith.truncf %47 : vector<32x8xf32> to vector<32x8xbf16>
    %cst_16 = arith.constant dense<0.000000e+00> : vector<32x384xf32>
    %49 = tpu.matmul %48, %2, %cst_16 {dimension_numbers = #tpu.dot_dimension_numbers<[1], [0], [0], [1], [0, 0, 1, 1], [], []>} : vector<32x8xbf16>, vector<8x384xbf16>, vector<32x384xf32> -> vector<32x384xf32>
    %50 = arith.extf %48 : vector<32x8xbf16> to vector<32x8xf32>
    %51 = arith.subf %47, %50 : vector<32x8xf32>
    %52 = arith.truncf %51 : vector<32x8xf32> to vector<32x8xbf16>
    %cst_17 = arith.constant dense<0.000000e+00> : vector<32x384xf32>
    %53 = tpu.matmul %52, %2, %cst_17 {dimension_numbers = #tpu.dot_dimension_numbers<[1], [0], [0], [1], [0, 0, 1, 1], [], []>} : vector<32x8xbf16>, vector<8x384xbf16>, vector<32x384xf32> -> vector<32x384xf32>
    %54 = arith.addf %49, %53 : vector<32x384xf32>
    %55 = arith.extf %52 : vector<32x8xbf16> to vector<32x8xf32>
    %56 = arith.subf %51, %55 : vector<32x8xf32>
    %57 = arith.truncf %56 : vector<32x8xf32> to vector<32x8xbf16>
    %cst_18 = arith.constant dense<0.000000e+00> : vector<32x384xf32>
    %58 = tpu.matmul %57, %2, %cst_18 {dimension_numbers = #tpu.dot_dimension_numbers<[1], [0], [0], [1], [0, 0, 1, 1], [], []>} : vector<32x8xbf16>, vector<8x384xbf16>, vector<32x384xf32> -> vector<32x384xf32>
    %59 = arith.addf %54, %58 : vector<32x384xf32>
    %c0_19 = arith.constant 0 : index
    %c0_20 = arith.constant 0 : index
    %60 = vector.load %arg2[%c0_19, %c0_20] : memref<2x384xf32, #tpu.memory_space<vmem>>, vector<2x384xf32>
    %61 = arith.mulf %29, %59 : vector<32x384xf32>
    %62 = vector.extract_strided_slice %60 {offsets = [0, 0], sizes = [1, 384], strides = [1, 1]} : vector<2x384xf32> to vector<1x384xf32>
    %63 = vector.broadcast %62 : vector<1x384xf32> to vector<32x384xf32>
    %64 = arith.mulf %61, %63 : vector<32x384xf32>
    %65 = vector.extract_strided_slice %60 {offsets = [1, 0], sizes = [1, 384], strides = [1, 1]} : vector<2x384xf32> to vector<1x384xf32>
    %66 = vector.broadcast %65 : vector<1x384xf32> to vector<32x384xf32>
    %67 = arith.addf %64, %66 : vector<32x384xf32>
    %c0_21 = arith.constant 0 : index
    %c0_22 = arith.constant 0 : index
    %68 = vector.load %arg5[%c0_21, %c0_22] : memref<32x384xf32, #tpu.memory_space<vmem>>, vector<32x384xf32>
    tpu.vector_store %arg5[%c0_21, %c0_22], %67 {strides = array<i32>} : memref<32x384xf32, #tpu.memory_space<vmem>>, vector<32x384xf32>,
    return
  }
  func.func @transform_0(%arg0: i32) -> (i32, i32) {
    %c0_i32 = arith.constant 0 : i32
    %c0_i32_0 = arith.constant 0 : i32
    return %arg0, %c0_i32 : i32, i32
  }
  func.func @transform_1(%arg0: i32) -> (i32, i32) {
    %c0_i32 = arith.constant 0 : i32
    %c0_i32_0 = arith.constant 0 : i32
    %c0_i32_1 = arith.constant 0 : i32
    return %c0_i32, %c0_i32_0 : i32, i32
  }
  func.func @transform_2(%arg0: i32) -> (i32, i32) {
    %c0_i32 = arith.constant 0 : i32
    %c0_i32_0 = arith.constant 0 : i32
    %c0_i32_1 = arith.constant 0 : i32
    return %c0_i32, %c0_i32_0 : i32, i32
  }
  func.func @transform_3(%arg0: i32) -> (i32, i32) {
    %c0_i32 = arith.constant 0 : i32
    %c0_i32_0 = arith.constant 0 : i32
    %c0_i32_1 = arith.constant 0 : i32
    return %c0_i32, %c0_i32_0 : i32, i32
  }
  func.func @transform_4(%arg0: i32) -> (i32, i32) {
    %c0_i32 = arith.constant 0 : i32
    %c0_i32_0 = arith.constant 0 : i32
    return %arg0, %c0_i32 : i32, i32
  }
}

</mosaic_0001>

<bundles_post_ra>
// kernel: tpu_custom_call.1
= control target key start
LH: loop header
LB: loop body
LE: loop exit
PB: predicated region body
PF: predicated region fallthrough
CT: control target
= control target key end

     0   :  { %9 = vsyncpa [#allocation3], 0  ;;  %s3021_s0 = inlined_call_operand.vmem [shape: f32[64,384], index: 0, kind: input, shape index: {}]   ;;  %s3022_s1 = inlined_call_operand.hbm [shape: f32[2,384], index: 1, kind: input, shape index: {}]   ;;  %s3023_s2 = inlined_call_operand.vmem [shape: bf16[384,8], index: 2, kind: input, shape index: {}]   ;;  %s3024_s3 = inlined_call_operand.vmem [shape: bf16[8,384], index: 3, kind: input, shape index: {}]   ;;  %s3025_s4 = inlined_call_operand.hbm [shape: f32[64,384], index: 4, kind: output, shape index: {}]  }
   0x1   :  { %10 = vsyncpa [#allocation4], 0 }
   0x2   :  { %12 = vsyncpa [#allocation4 + $0x1], 0  ;;  %s2159_s15 = smov 0   ;;  %s2161_s16 = smov 0  }
   0x3   :  { %s2163_s17 = smov 0   ;;  %s2165_s18 = smov 0  }
   0x4 LB: > { %s2180_s19 = sadd.s32 4294967295, %s2129_s18   ;;  %s1790_s20 = sadd.s32 4294967294, %s2129_s18   ;;  %s2129_s18 = sphi %s2165_s18, %s3080_s18   ;;  %s2125_s17 = sphi %s2163_s17, %s3079_s17   ;;  %s2121_s16 = sphi %s2161_s16, %s3078_s16   ;;  %s2117_s15 = sphi %s2159_s15, %s3077_s15  }
   0x5   : > { %s2184_s21 = sadd.s32 1, %s2129_s18   ;;  %s114_s22 = sadd.s32 1, %s2125_s17 }
   0x6   : > { %s111_s23 = ssub.s32 %s2129_s18, %s2184_s21  ;;  %p124_p0 = scmp.ne.s32.totalorder %s2125_s17, %s2121_s16 }
   0x7   : > { %p112_p1 = scmp.eq.s32.totalorder %s111_s23, 0  ;;  %p125_p2 = scmp.eq.s32.totalorder %s2180_s19, 1 }
   0x8   : > { %p130_p3 = scmp.ne.s32.totalorder %s2121_s16, %s2117_s15  ;;  %p131_p4 = scmp.eq.s32.totalorder %s1790_s20, 1 }
   0x9   : > { %s2195_s24 = scalar_select %p112_p1, %s2125_s17, %s114_s22  }
   0xa   : > { %p2197_p5 = por %p125_p2, %p124_p0  ;;  %p2201_p6 = por %p131_p4, %p130_p3 }
   0xb   : > { %p1791_p7 = scmp.ge.s32.totalorder %s2129_s18, 1  ;;  %p138_p8 = scmp.lt.s32.totalorder %s2129_s18, 3 }
   0xc   : > { %p1976_p9 = scmp.eq.s32.totalorder %s2180_s19, 0  ;;  %s150_s29 = sshll.u32 %s3022_s1, 4  ;;  %s151_s29 = int_to_ptr.hbm [resolvable:$true] %s150_s29 }
   0xd   : > { %p139_p10 = pnand %p1791_p7, %p138_p8  ;;  %s2131_s30 = smov [#allocation2]  }
   0xe   : > { %s152_s5 = sshll.u32 %s2131_s30, 4  ;;  %s153_s5 = int_to_ptr.vmem [resolvable:$true] %s152_s5 }
   0xf   : > { %p1968_p11 = pneg %p139_p10  ;;  %181 = sbr.rel (%p139_p10) target bundleno = 934 (0x3a6), region = 36 }
  0x11   : > { %p1969_p12 = pnand %p1976_p9, %p1968_p11 }
  0x13   : > { %1971 = dma.hbm_to_vmem [thread:$0]  (!%p1969_p12), %s151_s29, 96, %s153_s5, [#allocation3]  }
  0x14   : > { %2108 = dma.done.wait (%p1976_p9), [#allocation3], 96  }
  0x15   : > { %2110 = vsyncadd (%p1976_p9), [#allocation3], 4294967200  ;;  %s1796_s6 = sshll.u32 %s2180_s19, 2  ;;  %v2215_v0 = vld [vmem:[%s3023_s2 + $0x38] sm:$0xff]  ;;  %v2232_v3 = vld [vmem:[%s3023_s2 + $0x30] sm:$0xff]  ;;  %vm778_vm0 = vcmask 1043456  }
  0x16   : > { %p210_p13 = scmp.lt.s32.totalorder %s1796_s6, 7  ;;  %v2220_v1 = vld [vmem:[%s3023_s2 + $0x78] sm:$0xff]  ;;  %496 = vmatpush.bf16.msra.mxu0 %v2215_v0  ;;  %v2237_v4 = vld [vmem:[%s3023_s2 + $0x70] sm:$0xff]  ;;  %585 = vmatpush.bf16.msra.mxu3 %v2215_v0  ;;  %v2256_v6 = vld [vmem:[%s3023_s2 + $0x28] sm:$0xff]  ;;  %vm771_vm1 = vcmask 64512   ;;  %s1961_s22 = smul.u32 96, %s2180_s19 }
  0x17   : > { %v2225_v2 = vld [vmem:[%s3023_s2 + $0xb8] sm:$0xff]  ;;  %515 = vmatpush.bf16.msra.mxu1 %v2220_v1  ;;  %v2244_v5 = vld [vmem:[%s3023_s2 + $0xb0] sm:$0xff]  ;;  %v2261_v7 = vld [vmem:[%s3023_s2 + $0x68] sm:$0xff]  ;;  %s2083_s10 = scalar_lea.hbm %s3025_s4, 192 }
  0x18   : > { %s3082_s6 = smov (!%p210_p13, %s1796_s6), 7  ;;  %534 = vmatpush.bf16.msra.mxu2 %v2225_v2  ;;  %v2268_v8 = vld [vmem:[%s3023_s2 + $0xa8] sm:$0xff]  ;;  %v2293_v16 = vld [vmem:[%s3023_s2 + $0x20] sm:$0xff]  ;;  %v2324_v26 = vld [vmem:[%s3023_s2 + $0x18] sm:$0xff]  ;;  %s1712_s28 = scalar_lea.hbm %s3025_s4, %s1961_s22 }
  0x19   : > { %s1960_s13 = smul.u32 24, %s3082_s6  ;;  %v2298_v17 = vld [vmem:[%s3023_s2 + $0x60] sm:$0xff]  ;;  %v2329_v27 = vld [vmem:[%s3023_s2 + $0x58] sm:$0xff]  ;;  %v2357_v35 = vld [vmem:[%s3023_s2 + $0x10] sm:$0xff]  ;;  %s1715_s30 = sshll.u32 %s1712_s28, 4  ;;  %s1716_s30 = int_to_ptr.hbm [resolvable:$true] %s1715_s30 }
  0x1a   : > { %497 = vmatpush.bf16.msra.mxu0 %v2232_v3  ;;  %586 = vmatpush.bf16.msra.mxu3 %v2232_v3  ;;  %v2313_v21 = vld [vmem:[%s3023_s2 + $0xa0] sm:$0xff]  ;;  %v2338_v30 = vld [vmem:[%s3023_s2 + $0x98] sm:$0xff]  ;;  %v2362_v36 = vld [vmem:[%s3023_s2 + $0x50] sm:$0xff]  ;;  %s2077_s6 = sshra.s32 %s1716_s30, 4  ;;  %s2078_s6 = int_to_ptr.hbm [resolvable:$true] %s2077_s6 }
  0x1b   : > { %s2249_s5 = scalar_lea.vmem %s3021_s0, %s1960_s13  ;;  %516 = vmatpush.bf16.msra.mxu1 %v2237_v4  ;;  %v2373_v39 = vld [vmem:[%s3023_s2 + $0x90] sm:$0xff]  ;;  %v2400_v46 = vld [vmem:[%s3023_s2 + $0x8] sm:$0xff]  ;;  %v2445_v61 = vld [vmem:[%s3023_s2] sm:$0xff]  ;;  %s206_s13 = sand.u32 1, %s2121_s16  }
  0x1c   : > { %535 = vmatpush.bf16.msra.mxu2 %v2244_v5  ;;  %v2271_v9 = vld [vmem:[%s2249_s5] sm:$0xff]  ;;  %v2274_v10 = vld [vmem:[%s2249_s5 + $0x8] sm:$0xff]  ;;  %v2277_v11 = vld [vmem:[%s2249_s5 + $0x18] sm:$0xff]  ;;  %3058 = vst [vmem:[#allocation19_spill] sm:$0xff] %v2445_v61  ;;  %s1959_s14 = smul.u32 96, %s206_s13  ;;  %s1700_s19 = scalar_lea.sflag [#allocation4], %s206_s13 }
  0x1d   : > { %3047 = vst [vmem:[#allocation8_spill] sm:$0xff] %v2271_v9  ;;  %v2280_v12 = vld [vmem:[%s2249_s5 + $0x20] sm:$0xff]  ;;  %v2284_v13 = vpack.c.bf16 %v2274_v10, %v2271_v9  ;;  %v220_v14 = vld [vmem:[%s2249_s5 + $0x10] sm:$0xff]  ;;  %v223_v15 = vld [vmem:[%s2249_s5 + $0x28] sm:$0xff]  ;;  %s2079_s7 = scalar_lea.hbm %s2078_s6, 96  ;;  %p2084_p3 = scmp.lt.s32.totalorder %s2078_s6, %s3025_s4 }
  0x1e   : > { %3048 = vst [vmem:[#allocation9_spill] sm:$0xff] %v2274_v10  ;;  %498 = vmatpush.bf16.msra.mxu0 %v2256_v6  ;;  %v2302_v18 = vpack.c.bf16 %v2280_v12, %v2277_v11  ;;  %v2304_v19 = vpack.c.bf16 %v220_v14, %v220_v14  ;;  %v2306_v20 = vpack.c.bf16 %v223_v15, %v223_v15  ;;  %v2376_v40 = vld [vmem:[%s2249_s5 + $0x30] sm:$0xff]  ;;  %v2387_v43 = vld [vmem:[%s2249_s5 + $0x38] sm:$0xff]  ;;  %v2390_v44 = vld [vmem:[%s2249_s5 + $0x48] sm:$0xff]  ;;  %s2956_s20 = scalar_lea.vmem [#allocation5], %s1959_s14  ;;  %p2080_p0 = scmp.ne.s32.totalorder %s2078_s6, %s2079_s7 }
  0x1f   : > { %3049 = vst [vmem:[#allocation10_spill] sm:$0xff] %v2277_v11  ;;  %517 = vmatpush.bf16.msra.mxu1 %v2261_v7  ;;  %587 = vmatpush.bf16.msra.mxu3 %v2256_v6  ;;  %v288_v22 = vunpack.c.l.bf16 %v2284_v13  ;;  %v289_v23 = vunpack.c.h.bf16 %v2284_v13  ;;  %v2393_v45 = vld [vmem:[%s2249_s5 + $0x50] sm:$0xff]  ;;  %v2405_v47 = vld [vmem:[%s3023_s2 + $0x48] sm:$0xff]  ;;  %v2423_v51 = vld [vmem:[%s2249_s5 + $0x40] sm:$0xff]  ;;  %v561_v53 = vunpack.c.l.b16 %v2284_v13  ;;  %v2430_v55 = vpack.c.bf16 %v2387_v43, %v2376_v40  ;;  %s1713_s29 = sshll.u32 %s2956_s20, 4  ;;  %p2085_p4 = scmp.lt.s32.totalorder %s2083_s10, %s2079_s7  ;;  %s1714_s29 = int_to_ptr.vmem [resolvable:$true] %s1713_s29 }
  0x20   : > { %3050 = vst [vmem:[#allocation11_spill] sm:$0xff] %v2280_v12  ;;  %536 = vmatpush.bf16.msra.mxu2 %v2268_v8  ;;  %v291_v24 = vunpack.c.l.bf16 %v2302_v18  ;;  %v292_v25 = vunpack.c.h.bf16 %v2302_v18  ;;  %v290_v28 = vunpack.c.l.bf16 %v2304_v19  ;;  %v293_v29 = vunpack.c.l.bf16 %v2306_v20  ;;  %v2420_v50 = vld [vmem:[%s3023_s2 + $0x88] sm:$0xff]  ;;  %v229_v52 = vld [vmem:[%s2249_s5 + $0x58] sm:$0xff]  ;;  %v2450_v62 = vld [vmem:[%s3023_s2 + $0x40] sm:$0xff]  ;;  %p2081_p1 = pnand %p2080_p0, %p2197_p5 }
  0x21   : > { %v2341_v31 = vsub.f32 %v2271_v9, %v288_v22  ;;  %v2344_v32 = vsub.f32 %v2274_v10, %v289_v23  ;;  %3053 = vst [vmem:[#allocation14_spill] sm:$0xff] %v2376_v40  ;;  %v564_v54 = vunpack.c.l.b16 %v2302_v18  ;;  %v2434_v56 = vpack.c.bf16 %v2393_v45, %v2390_v44  ;;  %v2465_v23 = vld [vmem:[%s3023_s2 + $0x80] sm:$0xff]  ;;  %p2086_p7 = por %p2085_p4, %p2084_p3 }
  0x22   : > { %499 = vmatpush.bf16.msra.mxu0 %v2293_v16  ;;  %v2347_v33 = vsub.f32 %v2277_v11, %v291_v24  ;;  %v2350_v34 = vsub.f32 %v2280_v12, %v292_v25  ;;  %v2364_v37 = vsub.f32 %v220_v14, %v290_v28  ;;  %v2366_v38 = vsub.f32 %v223_v15, %v293_v29  ;;  %p2082_p2 = pneg %p2081_p1 }
  0x23   : > { %518 = vmatpush.bf16.msra.mxu1 %v2298_v17  ;;  %588 = vmatpush.bf16.msra.mxu3 %v2293_v16  ;;  %v2380_v41 = vpack.c.bf16 %v2344_v32, %v2341_v31  ;;  %3054 = vst [vmem:[#allocation15_spill] sm:$0xff] %v2387_v43  ;;  %v2456_v15 = vpack.c.bf16 %v2423_v51, %v2423_v51  ;;  %v294_v24 = vunpack.c.l.bf16 %v2430_v55  ;;  %v295_v25 = vunpack.c.h.bf16 %v2430_v55 }
  0x24   : > { %537 = vmatpush.bf16.msra.mxu2 %v2313_v21  ;;  %3051 = vst [vmem:[#allocation12_spill] sm:$0xff] %v2364_v37  ;;  %v2384_v42 = vpack.c.bf16 %v2350_v34, %v2347_v33  ;;  %v2409_v48 = vpack.c.bf16 %v2364_v37, %v2364_v37  ;;  %v2413_v49 = vpack.c.bf16 %v2366_v38, %v2366_v38  ;;  %v297_v11 = vunpack.c.l.bf16 %v2434_v56  ;;  %p2087_p8 = pnand %p2086_p7, %p2082_p2 }
  0x25   : > { %3052 = vst [vmem:[#allocation13_spill] sm:$0xff] %v2366_v38  ;;  %v328_v57 = vunpack.c.l.b16 %v2380_v41  ;;  %v329_v59 = vunpack.c.h.b16 %v2380_v41  ;;  %v2458_v22 = vpack.c.bf16 %v229_v52, %v229_v52  ;;  %v298_v12 = vunpack.c.h.bf16 %v2434_v56 }
  0x26   : > { %500 = vmatpush.bf16.msra.mxu0 %v2324_v26  ;;  %3055 = vst [vmem:[#allocation16_spill] sm:$0xff] %v2390_v44  ;;  %v331_v58 = vunpack.c.l.b16 %v2384_v42  ;;  %v332_v60 = vunpack.c.h.b16 %v2384_v42  ;;  %v330_v63 = vunpack.c.l.b16 %v2409_v48  ;;  %v333_v14 = vunpack.c.l.b16 %v2413_v49 }
  0x27   : > { %519 = vmatpush.bf16.msra.mxu1 %v2329_v27  ;;  %589 = vmatpush.bf16.msra.mxu3 %v2324_v26  ;;  %3056 = vst [vmem:[#allocation17_spill] sm:$0xff] %v2393_v45  ;;  %v573_v10 = vpack.c.b16 %v564_v54, %v561_v53  ;;  %v296_v38 = vunpack.c.l.bf16 %v2456_v15  ;;  %v299_v37 = vunpack.c.l.bf16 %v2458_v22  ;;  %v2486_v53 = vsub.f32 %v2390_v44, %v297_v11 }
  0x28   : > { %538 = vmatpush.bf16.msra.mxu2 %v2338_v30  ;;  %3057 = vst [vmem:[#allocation18_spill] sm:$0xff] %v2423_v51  ;;  %v340_v28 = vpack.c.b16 %v331_v58, %v328_v57  ;;  %v341_v29 = vpack.c.b16 %v332_v60, %v329_v59  ;;  %v342_v9 = vpack.c.b16 %v333_v14, %v330_v63 }
  0x29   : > { %3059 = vst [vmem:[#allocation20_spill] sm:$0xff] %v2450_v62  ;;  %v2480_v57 = vsub.f32 %v2376_v40, %v294_v24  ;;  %v2483_v58 = vsub.f32 %v2387_v43, %v295_v25  ;;  %v2489_v54 = vsub.f32 %v2393_v45, %v298_v12  ;;  %v2492_v59 = vsub.f32 %v2423_v51, %v296_v38 }
  0x2a   : > { %501 = vmatpush.bf16.msra.mxu0 %v2357_v35  ;;  %v2494_v60 = vsub.f32 %v229_v52, %v299_v37  ;;  %v567_v25 = vunpack.c.l.b16 %v2430_v55 }
  0x2b   : > { %520 = vmatpush.bf16.msra.mxu1 %v2362_v36  ;;  %590 = vmatpush.bf16.msra.mxu3 %v2357_v35  ;;  %v2502_v11 = vpack.c.bf16 %v2483_v58, %v2480_v57 }
  0x2c   : > { %539 = vmatpush.bf16.msra.mxu2 %v2373_v39  ;;  %v2514_v12 = vpack.c.bf16 %v2494_v60, %v2494_v60 }
  0x2d   : > { %v334_v37 = vunpack.c.l.b16 %v2502_v11  ;;  %v335_v52 = vunpack.c.h.b16 %v2502_v11 }
  0x2e   : > { %502 = vmatpush.bf16.msra.mxu0 %v2400_v46  ;;  %v339_v24 = vunpack.c.l.b16 %v2514_v12 }
  0x2f   : > { %521 = vmatpush.bf16.msra.mxu1 %v2405_v47  ;;  %591 = vmatpush.bf16.msra.mxu3 %v2400_v46 }
  0x30   : > { %540 = vmatpush.bf16.msra.mxu2 %v2420_v50 }
  0x32   : > { %503 = vmatpush.bf16.msra.mxu0 %v2445_v61 }
  0x33   : > { %522 = vmatpush.bf16.msra.mxu1 %v2450_v62  ;;  %592 = vmatpush.bf16.msra.mxu3 %v2445_v61 }
  0x34   : > { %541 = vmatpush.bf16.msra.mxu2 %v2465_v23 }
  0x35   : > { %504 = vmatmul.bf16.vlgmr.msra.gmra.mxu0 %v340_v28  ;;  %v570_v28 = vunpack.c.l.b16 %v2434_v56 }
  0x36   : > { %604 = vmatpush.bf16.msrb.mxu0 %v2220_v1  ;;  %523 = vmatmul.bf16.vlgmr.msra.gmra.mxu1 %v341_v29 }
  0x37   : > { %623 = vmatpush.bf16.msrb.mxu1 %v2225_v2  ;;  %542 = vmatmul.bf16.vlgmr.msra.gmra.mxu2 %v342_v9  ;;  %v2506_v9 = vpack.c.bf16 %v2489_v54, %v2486_v53  ;;  %v576_v45 = vpack.c.b16 %v570_v28, %v567_v25  ;;  %v3060_v28 = vld [vmem:[#allocation12_spill] sm:$0xff] }
  0x38   : > { %593 = vmatmul.bf16.vlgmr.msra.gmra.mxu3 %v573_v10  ;;  %672 = vmatpush.bf16.msrb.mxu2 %v2215_v0  ;;  %v2510_v10 = vpack.c.bf16 %v2492_v59, %v2492_v59 }
  0x39   : > { %691 = vmatpush.bf16.msrb.mxu3 %v2220_v1  ;;  %v337_v38 = vunpack.c.l.b16 %v2506_v9  ;;  %v338_v63 = vunpack.c.h.b16 %v2506_v9 }
  0x3a   : > { %605 = vmatpush.bf16.msrb.mxu0 %v2237_v4  ;;  %v336_v14 = vunpack.c.l.b16 %v2510_v10 }
  0x3b   : > { %624 = vmatpush.bf16.msrb.mxu1 %v2244_v5  ;;  %v343_v29 = vpack.c.b16 %v337_v38, %v334_v37  ;;  %v344_v51 = vpack.c.b16 %v338_v63, %v335_v52  ;;  %v642_v37 = vunpack.c.l.bf16 %v2380_v41  ;;  %v645_v38 = vunpack.c.l.bf16 %v2384_v42 }
  0x3c   : > { %673 = vmatpush.bf16.msrb.mxu2 %v2232_v3  ;;  %v345_v44 = vpack.c.b16 %v339_v24, %v336_v14  ;;  %v643_v52 = vunpack.c.h.bf16 %v2380_v41  ;;  %v644_v63 = vunpack.c.l.bf16 %v2409_v48  ;;  %v565_v14 = vunpack.c.h.b16 %v2302_v18 }
  0x3d   : > { %692 = vmatpush.bf16.msrb.mxu3 %v2237_v4  ;;  %v563_v41 = vunpack.c.l.b16 %v2304_v19  ;;  %v566_v48 = vunpack.c.l.b16 %v2306_v20  ;;  %v657_v24 = vsub.f32 %v2347_v33, %v645_v38 }
  0x3e   : > { %606 = vmatpush.bf16.msrb.mxu0 %v2261_v7  ;;  %v655_v25 = vsub.f32 %v2344_v32, %v643_v52 }
  0x3f   : > { %625 = vmatpush.bf16.msrb.mxu1 %v2268_v8  ;;  %v575_v20 = vpack.c.b16 %v566_v48, %v563_v41  ;;  %v569_v41 = vunpack.c.l.b16 %v2456_v15 }
  0x40   : > { %674 = vmatpush.bf16.msrb.mxu2 %v2256_v6 }
  0x41   : > { %693 = vmatpush.bf16.msrb.mxu3 %v2261_v7 }
  0x42   : > { %607 = vmatpush.bf16.msrb.mxu0 %v2298_v17 }
  0x43   : > { %626 = vmatpush.bf16.msrb.mxu1 %v2313_v21 }
  0x44   : > { %675 = vmatpush.bf16.msrb.mxu2 %v2293_v16 }
  0x45   : > { %694 = vmatpush.bf16.msrb.mxu3 %v2298_v17  ;;  %509 = vmatmul.bf16.gmra.mxu0 %v343_v29  ;;  %v3061_v29 = vld [vmem:[#allocation13_spill] sm:$0xff] }
  0x46   : > { %608 = vmatpush.bf16.msrb.mxu0 %v2329_v27  ;;  %528 = vmatmul.bf16.gmra.mxu1 %v344_v51  ;;  %v647_v51 = vunpack.c.l.bf16 %v2413_v49  ;;  %v654_v49 = vsub.f32 %v2341_v31, %v642_v37  ;;  %v653_v37 = vunpack.c.l.bf16 %v2514_v12  ;;  %v568_v12 = vunpack.c.h.b16 %v2430_v55 }
  0x47   : > { %627 = vmatpush.bf16.msrb.mxu1 %v2338_v30  ;;  %547 = vmatmul.bf16.gmra.mxu2 %v345_v44  ;;  %v646_v44 = vunpack.c.h.bf16 %v2384_v42 }
  0x48   : > { %598 = vmatmul.bf16.gmra.mxu3 %v576_v45  ;;  %676 = vmatpush.bf16.msrb.mxu2 %v2324_v26  ;;  %v562_v45 = vunpack.c.h.b16 %v2284_v13  ;;  %v656_v13 = vsub.f32 %v3060_v28, %v644_v63  ;;  %v659_v18 = vsub.f32 %v3061_v29, %v647_v51  ;;  %v666_v32 = vpack.c.bf16 %v657_v24, %v654_v49  ;;  %v278_v29 = vld [vmem:[%s3024_s3] sm:$0xff] }
  0x49   : > { %695 = vmatpush.bf16.msrb.mxu3 %v2329_v27  ;;  %v658_v42 = vsub.f32 %v2350_v34, %v646_v44  ;;  %v650_v34 = vunpack.c.l.bf16 %v2510_v10  ;;  %v665_v52 = vsub.f32 %v2494_v60, %v653_v37  ;;  %v648_v51 = vunpack.c.l.bf16 %v2502_v11 }
  0x4a   : > { %609 = vmatpush.bf16.msrb.mxu0 %v2362_v36  ;;  %v574_v19 = vpack.c.b16 %v565_v14, %v562_v45  ;;  %v668_v31 = vpack.c.bf16 %v659_v18, %v656_v13  ;;  %v651_v44 = vunpack.c.l.bf16 %v2506_v9  ;;  %v649_v45 = vunpack.c.h.bf16 %v2502_v11  ;;  %v279_v13 = vld [vmem:[%s3024_s3 + $0x8] sm:$0xf] }
  0x4b   : > { %628 = vmatpush.bf16.msrb.mxu1 %v2373_v39  ;;  %v667_v33 = vpack.c.bf16 %v658_v42, %v655_v25  ;;  %v662_v38 = vsub.f32 %v2492_v59, %v650_v34  ;;  %v652_v10 = vunpack.c.h.bf16 %v2506_v9  ;;  %v571_v14 = vunpack.c.h.b16 %v2434_v56 }
  0x4c   : > { %677 = vmatpush.bf16.msrb.mxu2 %v2357_v35  ;;  %v572_v59 = vunpack.c.l.b16 %v2458_v22  ;;  %v660_v60 = vsub.f32 %v2480_v57, %v648_v51  ;;  %v663_v48 = vsub.f32 %v2486_v53, %v651_v44  ;;  %v661_v49 = vsub.f32 %v2483_v58, %v649_v45 }
  0x4d   : > { %696 = vmatpush.bf16.msrb.mxu3 %v2362_v36  ;;  %v671_v63 = vpack.c.bf16 %v665_v52, %v662_v38  ;;  %v664_v11 = vsub.f32 %v2489_v54, %v652_v10  ;;  %v577_v24 = vpack.c.b16 %v571_v14, %v568_v12  ;;  %v766_v14 = vunpack.c.h.b16 %v278_v29 }
  0x4e   : > { %610 = vmatpush.bf16.msrb.mxu0 %v2405_v47  ;;  %v578_v9 = vpack.c.b16 %v572_v59, %v569_v41  ;;  %v669_v55 = vpack.c.bf16 %v663_v48, %v660_v60 }
  0x4f   : > { %629 = vmatpush.bf16.msrb.mxu1 %v2420_v50  ;;  %v670_v56 = vpack.c.bf16 %v664_v11, %v661_v49  ;;  %v769_v48 = vpack.c.b16 %v766_v14, %v766_v14 }
  0x50   : > { %678 = vmatpush.bf16.msrb.mxu2 %v2400_v46 }
  0x51   : > { %697 = vmatpush.bf16.msrb.mxu3 %v2405_v47 }
  0x52   : > { %611 = vmatpush.bf16.msrb.mxu0 %v2450_v62 }
  0x53   : > { %630 = vmatpush.bf16.msrb.mxu1 %v2465_v23 }
  0x54   : > { %679 = vmatpush.bf16.msrb.mxu2 %v2445_v61 }
  0x55   : > { %698 = vmatpush.bf16.msrb.mxu3 %v2450_v62  ;;  %612 = vmatmul.bf16.vlgmr.msrb.gmra.mxu0 %v574_v19  ;;  %v767_v19 = vunpack.c.l.b16 %v279_v13 }
  0x56   : > { %710 = vmatpush.bf16.msra.mxu0 %v2225_v2  ;;  %631 = vmatmul.bf16.vlgmr.msrb.gmra.mxu1 %v575_v20  ;;  %v765_v20 = vunpack.c.l.b16 %v278_v29 }
  0x57   : > { %680 = vmatmul.bf16.vlgmr.msrb.gmra.mxu2 %v666_v32 }
  0x58   : > { %699 = vmatmul.bf16.vlgmr.msrb.gmra.mxu3 %v667_v33  ;;  %v768_v32 = vpack.c.b16 %v765_v20, %v765_v20 }
  0x5a   : > { %711 = vmatpush.bf16.msra.mxu0 %v2244_v5  ;;  %v2602_v37 = vsel %vm778_vm0, %v768_v32, 0 }
  0x5b   : > { %3062 = vst [vmem:[#allocation12_spill] sm:$0xff] %v2602_v37  ;;  %795 = vmatpush.bf16.msra.mxu1 %v2602_v37 }
  0x5e   : > { %712 = vmatpush.bf16.msra.mxu0 %v2268_v8 }
  0x62   : > { %713 = vmatpush.bf16.msra.mxu0 %v2313_v21 }
  0x65   : > { %617 = vmatmul.bf16.gmra.mxu0 %v577_v24 }
  0x66   : > { %714 = vmatpush.bf16.msra.mxu0 %v2338_v30  ;;  %636 = vmatmul.bf16.gmra.mxu1 %v578_v9  ;;  %v2609_v9 = vsel %vm778_vm0, %v769_v48, 0 }
  0x67   : > { %685 = vmatmul.bf16.gmra.mxu2 %v669_v55  ;;  %3063 = vst [vmem:[#allocation13_spill] sm:$0xff] %v2609_v9  ;;  %887 = vmatpush.bf16.msrb.mxu1 %v2609_v9 }
  0x68   : > { %704 = vmatmul.bf16.gmra.mxu3 %v670_v56  ;;  %814 = vmatpush.bf16.msra.mxu2 %v2609_v9 }
  0x6a   : > { %715 = vmatpush.bf16.msra.mxu0 %v2373_v39 }
  0x6e   : > { %716 = vmatpush.bf16.msra.mxu0 %v2420_v50 }
  0x72   : > { %717 = vmatpush.bf16.msra.mxu0 %v2465_v23 }
  0x75   : > { %718 = vmatmul.bf16.vlgmr.msra.gmra.mxu0 %v668_v31  ;;  %v770_v31 = vpack.c.b16 %v767_v19, %v767_v19 }
  0x76   : > { %868 = vmatpush.bf16.msrb.mxu0 %v2602_v37 }
  0x77   : > { %v2599_v34 = vsel %vm778_vm0, %v770_v31, 0 }
  0x78   : > { %833 = vmatpush.bf16.msra.mxu3 %v2599_v34  ;;  %906 = vmatpush.bf16.msrb.mxu2 %v2599_v34 }
  0x7a   : > { %960 = vmatpush.bf16.msra.mxu0 %v2609_v9 }
  0x7c   : > { %941 = vmatpush.bf16.msrb.mxu3 %v2602_v37 }
  0x85   : > { %723 = vmatmul.bf16.gmra.mxu0 %v671_v63 }
  0xb2   : > { %v505_v15 = vpop.f32.mrf.mxu0 }
  0xb3   : > { %v524_v54 = vpop.f32.mrf.mxu1 }
  0xb4   : > { %v525_v41 = vadd.f32 %v524_v54, %v505_v15 }
  0xba   : > { %v507_v22 = vpop.f32.mrf.mxu0  ;;  %v543_v57 = vpop.f32.mrf.mxu2 }
  0xbb   : > { %v594_v58 = vpop.f32.mrf.mxu3  ;;  %v526_v18 = vpop.f32.mrf.mxu1  ;;  %v544_v49 = vadd.f32 %v543_v57, %v525_v41 }
  0xbc   : > { %v527_v56 = vadd.f32 %v526_v18, %v507_v22 }
  0xbd   : > { %v595_v55 = vadd.f32 %v594_v58, %v544_v49 }
  0xc2   : > { %v510_v53 = vpop.f32.mrf.mxu0  ;;  %v545_v42 = vpop.f32.mrf.mxu2 }
  0xc3   : > { %v596_v28 = vpop.f32.mrf.mxu3  ;;  %v529_v63 = vpop.f32.mrf.mxu1  ;;  %v546_v13 = vadd.f32 %v545_v42, %v527_v56 }
  0xc4   : > { %v530_v48 = vadd.f32 %v529_v63, %v510_v53 }
  0xc5   : > { %v597_v14 = vadd.f32 %v596_v28, %v546_v13 }
  0xca   : > { %v2590_v25 = vpop.f32.mrf.mxu0  ;;  %v548_v38 = vpop.f32.mrf.mxu2 }
  0xcb   : > { %v599_v52 = vpop.f32.mrf.mxu3  ;;  %v531_v10 = vpop.f32.mrf.mxu1  ;;  %v549_v43 = vadd.f32 %v548_v38, %v530_v48 }
  0xcc   : > { %v532_v49 = vadd.f32 %v531_v10, %v2590_v25 }
  0xcd   : > { %v600_v18 = vadd.f32 %v599_v52, %v549_v43 }
  0xd2   : > { %v613_v33 = vpop.f32.mrf.mxu0  ;;  %v550_v44 = vpop.f32.mrf.mxu2 }
  0xd3   : > { %v601_v45 = vpop.f32.mrf.mxu3  ;;  %v632_v11 = vpop.f32.mrf.mxu1  ;;  %v614_v15 = vadd.f32 %v613_v33, %v595_v55  ;;  %v551_v53 = vadd.f32 %v550_v44, %v532_v49 }
  0xd5   : > { %v633_v20 = vadd.f32 %v632_v11, %v614_v15  ;;  %v602_v52 = vadd.f32 %v601_v45, %v551_v53 }
  0xda   : > { %v615_v51 = vpop.f32.mrf.mxu0  ;;  %v681_v59 = vpop.f32.mrf.mxu2 }
  0xdb   : > { %v700_v60 = vpop.f32.mrf.mxu3  ;;  %v634_v32 = vpop.f32.mrf.mxu1  ;;  %v616_v37 = vadd.f32 %v615_v51, %v597_v14 }
  0xdc   : > { %v701_v54 = vadd.f32 %v700_v60, %v681_v59 }
  0xdd   : > { %v635_v58 = vadd.f32 %v634_v32, %v616_v37 }
  0xe2   : > { %v618_v12 = vpop.f32.mrf.mxu0  ;;  %v683_v29 = vpop.f32.mrf.mxu2 }
  0xe3   : > { %v702_v57 = vpop.f32.mrf.mxu3  ;;  %v619_v11 = vadd.f32 %v618_v12, %v600_v18  ;;  %v637_v55 = vpop.f32.mrf.mxu1 }
  0xe4   : > { %v703_v9 = vadd.f32 %v702_v57, %v683_v29 }
  0xe5   : > { %v638_v51 = vadd.f32 %v637_v55, %v619_v11 }
  0xea   : > { %v620_v24 = vpop.f32.mrf.mxu0  ;;  %v686_v33 = vpop.f32.mrf.mxu2 }
  0xeb   : > { %v705_v42 = vpop.f32.mrf.mxu3  ;;  %v621_v13 = vadd.f32 %v620_v24, %v602_v52  ;;  %v3065_v52 = vld [vmem:[#allocation20_spill] sm:$0xff] }
  0xec   : > { %v706_v28 = vadd.f32 %v705_v42, %v686_v33 }
  0xf2   : > { %v719_v19 = vpop.f32.mrf.mxu0  ;;  %v688_v44 = vpop.f32.mrf.mxu2 }
  0xf3   : > { %v720_v31 = vadd.f32 %v719_v19, %v701_v54 }
  0xf5   : > { %v729_v41 = vadd.f32 %v720_v31, %v633_v20 }
  0xf7   : > { %v733_v40 = vmul.f32 0.020833334, %v729_v41 }
  0xf9   : > { %v737_v62 = vpack.c.bf16 %v733_v40, %v733_v40 }
  0xfa   : > { %v721_v61 = vpop.f32.mrf.mxu0 }
  0xfb   : > { %v722_v22 = vadd.f32 %v721_v61, %v703_v9  ;;  %v741_v59 = vunpack.c.l.bf16 %v737_v62  ;;  %v849_v54 = vunpack.c.l.b16 %v737_v62  ;;  %v639_v62 = vpop.f32.mrf.mxu1 }
  0xfc   : > { %v640_v14 = vadd.f32 %v639_v62, %v621_v13  ;;  %v3067_v62 = vld [vmem:[#allocation8_spill] sm:$0xff] }
  0xfd   : > { %v730_v60 = vadd.f32 %v722_v22, %v635_v58  ;;  %v2616_v63 = vsub.f32 %v733_v40, %v741_v59  ;;  %v707_v40 = vpop.f32.mrf.mxu3 }
  0xfe   : > { %v708_v20 = vadd.f32 %v707_v40, %v688_v44  ;;  %v3066_v44 = vld [vmem:[#allocation9_spill] sm:$0xff] }
  0xff   : > { %v734_v56 = vmul.f32 0.020833334, %v730_v60  ;;  %v2620_v9 = vpack.c.bf16 %v2616_v63, %v2616_v63 }
 0x101   : > { %v738_v38 = vpack.c.bf16 %v734_v56, %v734_v56  ;;  %v757_v45 = vunpack.c.l.b16 %v2620_v9 }
 0x102   : > { %v724_v15 = vpop.f32.mrf.mxu0 }
 0x103   : > { %v742_v37 = vunpack.c.l.bf16 %v738_v38  ;;  %v850_v61 = vunpack.c.l.b16 %v738_v38  ;;  %v725_v43 = vadd.f32 %v724_v15, %v706_v28  ;;  %v918_v15 = vunpack.c.l.bf16 %v2620_v9 }
 0x105   : > { %v746_v25 = vsub.f32 %v734_v56, %v742_v37  ;;  %v2622_v10 = vpack.c.b16 %v850_v61, %v849_v54  ;;  %v731_v12 = vadd.f32 %v725_v43, %v638_v51  ;;  %v922_v37 = vsub.f32 %v2616_v63, %v918_v15  ;;  %v3064_v43 = vld [vmem:[#allocation19_spill] sm:$0xff] }
 0x107   : > { %v750_v29 = vpack.c.bf16 %v746_v25, %v746_v25  ;;  %v735_v57 = vmul.f32 0.020833334, %v731_v12  ;;  %1900 = vmatmul.msk.bf16.vlgmr.msrb.gmra.mxu0 %vm771_vm1, %v2622_v10 }
 0x108   : > { %1137 = vmatpush.bf16.msrb.mxu0 %v2225_v2 }
 0x109   : > { %v758_v19 = vunpack.c.l.b16 %v750_v29  ;;  %v739_v31 = vpack.c.bf16 %v735_v57, %v735_v57  ;;  %v919_v51 = vunpack.c.l.bf16 %v750_v29 }
 0x10a   : > { %v726_v32 = vpop.f32.mrf.mxu0 }
 0x10b   : > { %v727_v41 = vadd.f32 %v726_v32, %v708_v20  ;;  %v761_v48 = vpack.c.b16 %v758_v19, %v757_v45  ;;  %v743_v24 = vunpack.c.l.bf16 %v739_v31  ;;  %v851_v59 = vunpack.c.l.b16 %v739_v31 }
 0x10c   : > { %1138 = vmatpush.bf16.msrb.mxu0 %v2244_v5  ;;  %v923_v54 = vsub.f32 %v746_v25, %v919_v51 }
 0x10d   : > { %v732_v58 = vadd.f32 %v727_v41, %v640_v14  ;;  %1894 = vmatmul.msk.bf16.vlgmr.msra.gmra.mxu1 %vm771_vm1, %v761_v48  ;;  %1896 = vmatmul.msk.bf16.vlgmr.msra.gmra.mxu2 %vm771_vm1, %v761_v48  ;;  %v747_v18 = vsub.f32 %v735_v57, %v743_v24  ;;  %v3068_v24 = vld [vmem:[#allocation11_spill] sm:$0xff] }
 0x10e   : > { %1898 = vmatmul.msk.bf16.vlgmr.msra.gmra.mxu3 %vm771_vm1, %v761_v48  ;;  %979 = vmatpush.bf16.msra.mxu1 %v2599_v34  ;;  %v926_v61 = vpack.c.bf16 %v923_v54, %v922_v37 }
 0x10f   : > { %v736_v22 = vmul.f32 0.020833334, %v732_v58  ;;  %1099 = vmatpush.bf16.msra.mxu2 %v2215_v0  ;;  %1118 = vmatpush.bf16.msra.mxu3 %v2220_v1  ;;  %v751_v49 = vpack.c.bf16 %v747_v18, %v747_v18 }
 0x110   : > { %1139 = vmatpush.bf16.msrb.mxu0 %v2268_v8 }
 0x111   : > { %v740_v33 = vpack.c.bf16 %v736_v22, %v736_v22  ;;  %v759_v56 = vunpack.c.l.b16 %v751_v49  ;;  %v920_v9 = vunpack.c.l.bf16 %v751_v49  ;;  %v3069_v49 = vld [vmem:[#allocation10_spill] sm:$0xff] }
 0x113   : > { %v744_v42 = vunpack.c.l.bf16 %v740_v33  ;;  %v852_v60 = vunpack.c.l.b16 %v740_v33  ;;  %1100 = vmatpush.bf16.msra.mxu2 %v2232_v3  ;;  %1119 = vmatpush.bf16.msra.mxu3 %v2237_v4  ;;  %v924_v12 = vsub.f32 %v747_v18, %v920_v9  ;;  %v3070_v9 = vld [vmem:[#allocation15_spill] sm:$0xff] }
 0x114   : > { %1140 = vmatpush.bf16.msrb.mxu0 %v2313_v21 }
 0x115   : > { %v748_v11 = vsub.f32 %v736_v22, %v744_v42  ;;  %v854_v55 = vpack.c.b16 %v852_v60, %v851_v59 }
 0x117   : > { %1901 = vmatmul.msk.bf16.gmra.mxu0 %vm771_vm1, %v854_v55  ;;  %v752_v28 = vpack.c.bf16 %v748_v11, %v748_v11  ;;  %1101 = vmatpush.bf16.msra.mxu2 %v2256_v6 }
 0x118   : > { %1120 = vmatpush.bf16.msra.mxu3 %v2261_v7  ;;  %1141 = vmatpush.bf16.msrb.mxu0 %v2338_v30 }
 0x119   : > { %v760_v53 = vunpack.c.l.b16 %v752_v28  ;;  %v921_v63 = vunpack.c.l.bf16 %v752_v28 }
 0x11b   : > { %v762_v38 = vpack.c.b16 %v760_v53, %v759_v56  ;;  %1102 = vmatpush.bf16.msra.mxu2 %v2293_v16  ;;  %v925_v25 = vsub.f32 %v748_v11, %v921_v63 }
 0x11c   : > { %1121 = vmatpush.bf16.msra.mxu3 %v2298_v17  ;;  %1142 = vmatpush.bf16.msrb.mxu0 %v2373_v39 }
 0x11d   : > { %1895 = vmatmul.msk.bf16.gmra.mxu1 %vm771_vm1, %v762_v38  ;;  %1897 = vmatmul.msk.bf16.gmra.mxu2 %vm771_vm1, %v762_v38 }
 0x11e   : > { %1899 = vmatmul.msk.bf16.gmra.mxu3 %vm771_vm1, %v762_v38 }
 0x11f   : > { %1103 = vmatpush.bf16.msra.mxu2 %v2324_v26 }
 0x120   : > { %1122 = vmatpush.bf16.msra.mxu3 %v2329_v27  ;;  %1143 = vmatpush.bf16.msrb.mxu0 %v2420_v50 }
 0x123   : > { %1104 = vmatpush.bf16.msra.mxu2 %v2357_v35 }
 0x124   : > { %1123 = vmatpush.bf16.msra.mxu3 %v2362_v36  ;;  %1144 = vmatpush.bf16.msrb.mxu0 %v2465_v23 }
 0x127   : > { %1908 = vmatmul.msk.bf16.vlgmr.msra.gmra.mxu0 %vm771_vm1, %v926_v61  ;;  %1105 = vmatpush.bf16.msra.mxu2 %v2400_v46 }
 0x128   : > { %1124 = vmatpush.bf16.msra.mxu3 %v2405_v47  ;;  %1275 = vmatpush.bf16.msra.mxu0 %v2215_v0 }
 0x12b   : > { %1106 = vmatpush.bf16.msra.mxu2 %v3064_v43 }
 0x12c   : > { %1125 = vmatpush.bf16.msra.mxu3 %v3065_v52  ;;  %1276 = vmatpush.bf16.msra.mxu0 %v2232_v3 }
 0x12d   : > { %1902 = vmatmul.msk.bf16.vlgmr.msrb.gmra.mxu1 %vm771_vm1, %v2622_v10  ;;  %1904 = vmatmul.msk.bf16.vlgmr.msrb.gmra.mxu2 %vm771_vm1, %v2622_v10  ;;  %v927_v10 = vpack.c.bf16 %v925_v25, %v924_v12 }
 0x12e   : > { %1906 = vmatmul.msk.bf16.vlgmr.msrb.gmra.mxu3 %vm771_vm1, %v926_v61  ;;  %1188 = vmatpush.bf16.msrb.mxu1 %v2215_v0 }
 0x12f   : > { %1207 = vmatpush.bf16.msrb.mxu2 %v2220_v1 }
 0x130   : > { %1226 = vmatpush.bf16.msrb.mxu3 %v2225_v2  ;;  %1277 = vmatpush.bf16.msra.mxu0 %v2256_v6 }
 0x132   : > { %1189 = vmatpush.bf16.msrb.mxu1 %v2232_v3 }
 0x133   : > { %1208 = vmatpush.bf16.msrb.mxu2 %v2237_v4 }
 0x134   : > { %1227 = vmatpush.bf16.msrb.mxu3 %v2244_v5  ;;  %1278 = vmatpush.bf16.msra.mxu0 %v2293_v16 }
 0x136   : > { %1190 = vmatpush.bf16.msrb.mxu1 %v2256_v6 }
 0x137   : > { %1909 = vmatmul.msk.bf16.gmra.mxu0 %vm771_vm1, %v927_v10  ;;  %1209 = vmatpush.bf16.msrb.mxu2 %v2261_v7 }
 0x138   : > { %1228 = vmatpush.bf16.msrb.mxu3 %v2268_v8  ;;  %1279 = vmatpush.bf16.msra.mxu0 %v2324_v26 }
 0x13a   : > { %1191 = vmatpush.bf16.msrb.mxu1 %v2293_v16 }
 0x13b   : > { %1210 = vmatpush.bf16.msrb.mxu2 %v2298_v17 }
 0x13c   : > { %1229 = vmatpush.bf16.msrb.mxu3 %v2313_v21  ;;  %1280 = vmatpush.bf16.msra.mxu0 %v2357_v35 }
 0x13d   : > { %1903 = vmatmul.msk.bf16.gmra.mxu1 %vm771_vm1, %v854_v55  ;;  %1905 = vmatmul.msk.bf16.gmra.mxu2 %vm771_vm1, %v854_v55 }
 0x13e   : > { %1907 = vmatmul.msk.bf16.gmra.mxu3 %vm771_vm1, %v927_v10  ;;  %1192 = vmatpush.bf16.msrb.mxu1 %v2324_v26 }
 0x13f   : > { %1211 = vmatpush.bf16.msrb.mxu2 %v2329_v27 }
 0x140   : > { %1230 = vmatpush.bf16.msrb.mxu3 %v2338_v30  ;;  %1281 = vmatpush.bf16.msra.mxu0 %v2400_v46 }
 0x142   : > { %1193 = vmatpush.bf16.msrb.mxu1 %v2357_v35 }
 0x143   : > { %1212 = vmatpush.bf16.msrb.mxu2 %v2362_v36 }
 0x144   : > { %1231 = vmatpush.bf16.msrb.mxu3 %v2373_v39  ;;  %1282 = vmatpush.bf16.msra.mxu0 %v3064_v43 }
 0x146   : > { %1194 = vmatpush.bf16.msrb.mxu1 %v2400_v46 }
 0x147   : > { %1213 = vmatpush.bf16.msrb.mxu2 %v2405_v47 }
 0x148   : > { %1232 = vmatpush.bf16.msrb.mxu3 %v2420_v50 }
 0x14a   : > { %1195 = vmatpush.bf16.msrb.mxu1 %v3064_v43 }
 0x14b   : > { %1214 = vmatpush.bf16.msrb.mxu2 %v3065_v52 }
 0x14c   : > { %1233 = vmatpush.bf16.msrb.mxu3 %v2465_v23 }
 0x14d   : > { %1910 = vmatmul.msk.bf16.vlgmr.msra.gmra.mxu1 %vm771_vm1, %v926_v61 }
 0x14e   : > { %1294 = vmatpush.bf16.msra.mxu1 %v2220_v1 }
 0x152   : > { %1295 = vmatpush.bf16.msra.mxu1 %v2237_v4 }
 0x156   : > { %1296 = vmatpush.bf16.msra.mxu1 %v2261_v7 }
 0x15a   : > { %1297 = vmatpush.bf16.msra.mxu1 %v2298_v17 }
 0x15d   : > { %1911 = vmatmul.msk.bf16.gmra.mxu1 %vm771_vm1, %v927_v10 }
 0x15e   : > { %1298 = vmatpush.bf16.msra.mxu1 %v2329_v27 }
 0x162   : > { %1299 = vmatpush.bf16.msra.mxu1 %v2362_v36 }
 0x166   : > { %1300 = vmatpush.bf16.msra.mxu1 %v2405_v47 }
 0x16a   : > { %1301 = vmatpush.bf16.msra.mxu1 %v3065_v52 }
 0x184   : > { %v870_v0 = vpop.f32.mrf.mxu0 }
 0x18a   : > { %v797_v2 = vpop.f32.mrf.mxu1 }
 0x18b   : > { %v871_v47 = vadd.f32 %v870_v0, %v797_v2 }
 0x18c   : > { %v872_v3 = vpop.f32.mrf.mxu0 }
 0x190   : > { %v816_v6 = vpop.f32.mrf.mxu2 }
 0x191   : > { %v2713_v1 = vpop.f32.mrf.mxu3 }
 0x192   : > { %v799_v4 = vpop.f32.mrf.mxu1 }
 0x193   : > { %v873_v14 = vadd.f32 %v872_v3, %v799_v4 }
 0x194   : > { %v875_v5 = vpop.f32.mrf.mxu0 }
 0x198   : > { %v818_v17 = vpop.f32.mrf.mxu2 }
 0x199   : > { %v2715_v7 = vpop.f32.mrf.mxu3 }
 0x19a   : > { %v802_v8 = vpop.f32.mrf.mxu1 }
 0x19b   : > { %v876_v54 = vadd.f32 %v875_v5, %v802_v8 }
 0x19c   : > { %v877_v16 = vpop.f32.mrf.mxu0 }
 0x1a0   : > { %v821_v36 = vpop.f32.mrf.mxu2 }
 0x1a1   : > { %v2717_v21 = vpop.f32.mrf.mxu3 }
 0x1a2   : > { %v804_v26 = vpop.f32.mrf.mxu1 }
 0x1a4   : > { %v962_v27 = vpop.f32.mrf.mxu0 }
 0x1a8   : > { %v823_v19 = vpop.f32.mrf.mxu2 }
 0x1a9   : > { %v2719_v30 = vpop.f32.mrf.mxu3 }
 0x1aa   : > { %v889_v35 = vpop.f32.mrf.mxu1 }
 0x1ab   : > { %v890_v39 = vadd.f32 %v889_v35, %v816_v6  ;;  %v3071_v6 = vld [vmem:[#allocation14_spill] sm:$0xff] }
 0x1ac   : > { %v964_v50 = vpop.f32.mrf.mxu0 }
 0x1ad   : > { %v992_v46 = vadd.f32 %v962_v27, %v890_v39 }
 0x1af   : > { %v2722_v40 = vsub.f32 %v3066_v44, %v992_v46  ;;  %v878_v46 = vadd.f32 %v877_v16, %v804_v26 }
 0x1b0   : > { %v908_v56 = vpop.f32.mrf.mxu2 }
 0x1b1   : > { %v943_v23 = vpop.f32.mrf.mxu3  ;;  %v1016_v20 = vmul.f32 %v2722_v40, %v2722_v40  ;;  %v909_v44 = vadd.f32 %v908_v56, %v2713_v1 }
 0x1b2   : > { %v991_v13 = vadd.f32 %v943_v23, %v871_v47  ;;  %v891_v29 = vpop.f32.mrf.mxu1 }
 0x1b3   : > { %v892_v57 = vadd.f32 %v891_v29, %v818_v17 }
 0x1b4   : > { %v2725_v45 = vsub.f32 %v3067_v62, %v991_v13  ;;  %v967_v33 = vpop.f32.mrf.mxu0 }
 0x1b5   : > { %v995_v32 = vadd.f32 %v964_v50, %v892_v57 }
 0x1b6   : > { %v1015_v31 = vmul.f32 %v2725_v45, %v2725_v45 }
 0x1b7   : > { %v2734_v58 = vsub.f32 %v3068_v24, %v995_v32 }
 0x1b8   : > { %v2731_v41 = vpack.c.bf16 %v1016_v20, %v1015_v31  ;;  %v910_v13 = vpop.f32.mrf.mxu2 }
 0x1b9   : > { %v945_v48 = vpop.f32.mrf.mxu3  ;;  %v1019_v55 = vmul.f32 %v2734_v58, %v2734_v58 }
 0x1ba   : > { %v994_v22 = vadd.f32 %v945_v48, %v873_v14  ;;  %v894_v18 = vpop.f32.mrf.mxu1  ;;  %v1035_v59 = vunpack.c.l.bf16 %v2731_v41  ;;  %v1036_v60 = vunpack.c.h.bf16 %v2731_v41  ;;  %v1164_v63 = vunpack.c.l.b16 %v2731_v41 }
 0x1bb   : > { %v895_v42 = vadd.f32 %v894_v18, %v821_v36  ;;  %v2022_v18 = vld [vmem:[%s2249_s5 + $0x10] sm:$0xff] }
 0x1bc   : > { %v2739_v11 = vsub.f32 %v3069_v49, %v994_v22  ;;  %v2745_v38 = vsub.f32 %v1015_v31, %v1035_v59  ;;  %v2747_v51 = vsub.f32 %v1016_v20, %v1036_v60  ;;  %v969_v5 = vpop.f32.mrf.mxu0  ;;  %v3073_v22 = vld [vmem:[#allocation16_spill] sm:$0xff] }
 0x1bd   : > { %v998_v53 = vadd.f32 %v967_v33, %v895_v42  ;;  %v2023_v42 = vld [vmem:[%s3023_s2 + $0xb8] sm:$0xff]  ;;  %v3074_v49 = vld [vmem:[#allocation12_spill] sm:$0xff] }
 0x1be   : > { %v1018_v28 = vmul.f32 %v2739_v11, %v2739_v11  ;;  %v2760_v2 = vpack.c.bf16 %v2747_v51, %v2745_v38 }
 0x1bf   : > { %v2755_v25 = vsub.f32 %v3070_v9, %v998_v53 }
 0x1c0   : > { %v2749_v15 = vpack.c.bf16 %v1019_v55, %v1018_v28  ;;  %v1075_v47 = vunpack.c.l.b16 %v2760_v2  ;;  %v1076_v62 = vunpack.c.h.b16 %v2760_v2 }
 0x1c1   : > { %v948_v37 = vpop.f32.mrf.mxu3  ;;  %v1022_v36 = vmul.f32 %v2755_v25, %v2755_v25 }
 0x1c2   : > { %v1038_v61 = vunpack.c.l.bf16 %v2749_v15  ;;  %v1039_v43 = vunpack.c.h.bf16 %v2749_v15  ;;  %v896_v52 = vpop.f32.mrf.mxu1  ;;  %v997_v12 = vadd.f32 %v948_v37, %v876_v54  ;;  %v1167_v0 = vunpack.c.l.b16 %v2749_v15 }
 0x1c3   : > { %v897_v10 = vadd.f32 %v896_v52, %v823_v19  ;;  %v3072_v19 = vld [vmem:[#allocation17_spill] sm:$0xff]  ;;  %v911_v54 = vadd.f32 %v910_v13, %v2715_v7 }
 0x1c4   : > { %v2762_v3 = vsub.f32 %v1018_v28, %v1038_v61  ;;  %v2764_v4 = vsub.f32 %v1019_v55, %v1039_v43  ;;  %v2767_v8 = vsub.f32 %v3071_v6, %v997_v12  ;;  %v1176_v17 = vpack.c.b16 %v1167_v0, %v1164_v63  ;;  %v2024_v61 = vld [vmem:[%s3023_s2 + $0xb0] sm:$0xff] }
 0x1c5   : > { %v1001_v35 = vadd.f32 %v969_v5, %v897_v10  ;;  %v913_v10 = vpop.f32.mrf.mxu2 }
 0x1c6   : > { %v2771_v27 = vpack.c.bf16 %v2764_v4, %v2762_v3  ;;  %v1021_v39 = vmul.f32 %v2767_v8, %v2767_v8  ;;  %1196 = vmatmul.bf16.vlgmr.msrb.gmra.mxu1 %v1176_v17 }
 0x1c7   : > { %1461 = vmatpush.bf16.msrb.mxu1 %v2599_v34  ;;  %v2786_v20 = vsub.f32 %v3072_v19, %v1001_v35 }
 0x1c8   : > { %v1078_v50 = vunpack.c.l.b16 %v2771_v27  ;;  %v1079_v23 = vunpack.c.h.b16 %v2771_v27  ;;  %v2782_v29 = vpack.c.bf16 %v1022_v36, %v1021_v39 }
 0x1c9   : > { %v950_v57 = vpop.f32.mrf.mxu3  ;;  %v1025_v59 = vmul.f32 %v2786_v20, %v2786_v20 }
 0x1ca   : > { %v1000_v16 = vadd.f32 %v950_v57, %v878_v46  ;;  %v981_v26 = vpop.f32.mrf.mxu1  ;;  %v1087_v31 = vpack.c.b16 %v1078_v50, %v1075_v47  ;;  %v1088_v14 = vpack.c.b16 %v1079_v23, %v1076_v62  ;;  %v1041_v48 = vunpack.c.l.bf16 %v2782_v29  ;;  %v2026_v46 = vld [vmem:[%s3023_s2 + $0xa8] sm:$0xff] }
 0x1cb   : > { %v993_v32 = vadd.f32 %v981_v26, %v909_v44  ;;  %v1042_v24 = vunpack.c.h.bf16 %v2782_v29  ;;  %v1170_v9 = vunpack.c.l.b16 %v2782_v29  ;;  %v914_v62 = vadd.f32 %v913_v10, %v2717_v21  ;;  %v2027_v26 = vld [vmem:[%s3023_s2 + $0xa0] sm:$0xff] }
 0x1cc   : > { %v2791_v1 = vsub.f32 %v3073_v22, %v1000_v16  ;;  %1107 = vmatmul.bf16.vlgmr.msra.gmra.mxu2 %v1087_v31  ;;  %1126 = vmatmul.bf16.vlgmr.msra.gmra.mxu3 %v1088_v14  ;;  %v2806_v28 = vsub.f32 %v1021_v39, %v1041_v48  ;;  %v1249_v22 = vunpack.c.h.bf16 %v2771_v27 }
 0x1cd   : > { %v2794_v33 = vsub.f32 %v2022_v18, %v993_v32  ;;  %1313 = vmatpush.bf16.msra.mxu2 %v2023_v42  ;;  %1423 = vmatpush.bf16.msra.mxu3 %v3074_v49  ;;  %v2808_v56 = vsub.f32 %v1022_v36, %v1042_v24  ;;  %v2025_v36 = vld [vmem:[%s2249_s5 + $0x28] sm:$0xff]  ;;  %v915_v18 = vpop.f32.mrf.mxu2 }
 0x1ce   : > { %v1024_v60 = vmul.f32 %v2791_v1, %v2791_v1 }
 0x1cf   : > { %v1017_v55 = vmul.f32 %v2794_v33, %v2794_v33  ;;  %v2824_v7 = vpack.c.bf16 %v2808_v56, %v2806_v28 }
 0x1d0   : > { %v2810_v53 = vpack.c.bf16 %v1025_v59, %v1024_v60 }
 0x1d1   : > { %v2813_v37 = vpack.c.bf16 %v1017_v55, %v1017_v55  ;;  %1314 = vmatpush.bf16.msra.mxu2 %v2024_v61  ;;  %v1081_v23 = vunpack.c.l.b16 %v2824_v7  ;;  %v1082_v13 = vunpack.c.h.b16 %v2824_v7 }
 0x1d2   : > { %v1044_v43 = vunpack.c.l.bf16 %v2810_v53  ;;  %v1045_v52 = vunpack.c.h.bf16 %v2810_v53  ;;  %v983_v63 = vpop.f32.mrf.mxu1  ;;  %v1173_v12 = vunpack.c.l.b16 %v2810_v53 }
 0x1d3   : > { %v996_v0 = vadd.f32 %v983_v63, %v911_v54  ;;  %v1037_v35 = vunpack.c.l.bf16 %v2813_v37  ;;  %v1246_v54 = vunpack.c.h.bf16 %v2760_v2  ;;  %v1261_v63 = vsub.f32 %v2764_v4, %v1249_v22 }
 0x1d4   : > { %v2826_v5 = vsub.f32 %v1024_v60, %v1044_v43  ;;  %v2828_v6 = vsub.f32 %v1025_v59, %v1045_v52  ;;  %v1179_v17 = vpack.c.b16 %v1173_v12, %v1170_v9  ;;  %v3075_v59 = vld [vmem:[#allocation18_spill] sm:$0xff]  ;;  %v916_v52 = vadd.f32 %v915_v18, %v2719_v30 }
 0x1d5   : > { %v2832_v39 = vsub.f32 %v2025_v36, %v996_v0  ;;  %1315 = vmatpush.bf16.msra.mxu2 %v2026_v46  ;;  %v2848_v19 = vsub.f32 %v1017_v55, %v1037_v35  ;;  %v2028_v55 = vld [vmem:[%s3023_s2 + $0x98] sm:$0xff]  ;;  %v2029_v0 = vld [vmem:[%s3023_s2 + $0x90] sm:$0xff]  ;;  %v1258_v35 = vsub.f32 %v2747_v51, %v1246_v54 }
 0x1d6   : > { %v2839_v47 = vpack.c.bf16 %v2828_v6, %v2826_v5  ;;  %1201 = vmatmul.bf16.gmra.mxu1 %v1179_v17 }
 0x1d7   : > { %v1020_v50 = vmul.f32 %v2832_v39, %v2832_v39  ;;  %v2856_v21 = vpack.c.bf16 %v2848_v19, %v2848_v19  ;;  %v1270_v4 = vpack.c.bf16 %v1261_v63, %v1258_v35 }
 0x1d8   : > { %v1084_v44 = vunpack.c.l.b16 %v2839_v47  ;;  %v1085_v57 = vunpack.c.h.b16 %v2839_v47 }
 0x1d9   : > { %v1030_v16 = vpack.c.bf16 %v1020_v50, %v1020_v50  ;;  %1316 = vmatpush.bf16.msra.mxu2 %v2027_v26  ;;  %v1077_v12 = vunpack.c.l.b16 %v2856_v21  ;;  %v1165_v26 = vunpack.c.h.b16 %v2731_v41  ;;  %v1255_v41 = vunpack.c.h.bf16 %v2839_v47 }
 0x1da   : > { %v986_v31 = vpop.f32.mrf.mxu1  ;;  %v1090_v32 = vpack.c.b16 %v1084_v44, %v1081_v23  ;;  %v1091_v14 = vpack.c.b16 %v1085_v57, %v1082_v13  ;;  %v2030_v23 = vld [vmem:[%s2249_s5 + $0x58] sm:$0xff]  ;;  %v2031_v44 = vld [vmem:[%s3023_s2 + $0x88] sm:$0xff]  ;;  %v1168_v13 = vunpack.c.h.b16 %v2749_v15 }
 0x1db   : > { %v1040_v48 = vunpack.c.l.bf16 %v1030_v16  ;;  %v999_v24 = vadd.f32 %v986_v31, %v914_v62  ;;  %v3076_v57 = vld [vmem:[#allocation13_spill] sm:$0xff]  ;;  %v1169_v62 = vunpack.c.l.b16 %v1030_v16  ;;  %v1166_v31 = vunpack.c.l.b16 %v2813_v37 }
 0x1dc   : > { %1112 = vmatmul.bf16.gmra.mxu2 %v1090_v32  ;;  %1131 = vmatmul.bf16.gmra.mxu3 %v1091_v14  ;;  %v1177_v15 = vpack.c.b16 %v1168_v13, %v1165_v26 }
 0x1dd   : > { %v2858_v42 = vsub.f32 %v1020_v50, %v1040_v48  ;;  %v2861_v60 = vsub.f32 %v3075_v59, %v999_v24  ;;  %1317 = vmatpush.bf16.msra.mxu2 %v2028_v55  ;;  %v2032_v48 = vld [vmem:[%s3023_s2 + $0x80] sm:$0xff]  ;;  %v1178_v16 = vpack.c.b16 %v1169_v62, %v1166_v31  ;;  %v1252_v59 = vunpack.c.h.bf16 %v2824_v7 }
 0x1df   : > { %v2869_v61 = vpack.c.bf16 %v2858_v42, %v2858_v42  ;;  %v1023_v43 = vmul.f32 %v2861_v60, %v2861_v60  ;;  %v1264_v63 = vsub.f32 %v2808_v56, %v1252_v59 }
 0x1e1   : > { %v1032_v9 = vpack.c.bf16 %v1023_v43, %v1023_v43  ;;  %v1080_v10 = vunpack.c.l.b16 %v2869_v61  ;;  %1318 = vmatpush.bf16.msra.mxu2 %v2029_v0 }
 0x1e2   : > { %v988_v17 = vpop.f32.mrf.mxu1 }
 0x1e3   : > { %v1002_v36 = vadd.f32 %v988_v17, %v916_v52  ;;  %v1089_v46 = vpack.c.b16 %v1080_v10, %v1077_v12  ;;  %v1043_v50 = vunpack.c.l.bf16 %v1032_v9  ;;  %v1174_v10 = vunpack.c.h.b16 %v2810_v53 }
 0x1e4   : > { %v1172_v17 = vunpack.c.l.b16 %v1032_v9 }
 0x1e5   : > { %v2882_v30 = vsub.f32 %v2030_v23, %v1002_v36  ;;  %1145 = vmatmul.bf16.vlgmr.msrb.gmra.mxu0 %v1089_v46  ;;  %1319 = vmatpush.bf16.msra.mxu2 %v2031_v44  ;;  %v1055_v32 = vsub.f32 %v1023_v43, %v1043_v50  ;;  %v1267_v43 = vsub.f32 %v2828_v6, %v1255_v41  ;;  %v1248_v36 = vunpack.c.l.bf16 %v2771_v27 }
 0x1e6   : > { %1442 = vmatpush.bf16.msrb.mxu0 %v3076_v57  ;;  %1302 = vmatmul.bf16.vlgmr.msra.gmra.mxu1 %v1270_v4  ;;  %v1245_v50 = vunpack.c.l.bf16 %v2760_v2  ;;  %v1250_v23 = vunpack.c.l.bf16 %v2869_v61  ;;  %v1247_v4 = vunpack.c.l.bf16 %v2856_v21  ;;  %v1254_v2 = vunpack.c.l.bf16 %v2839_v47 }
 0x1e7   : > { %v1026_v51 = vmul.f32 %v2882_v30, %v2882_v30  ;;  %1569 = vmatpush.bf16.msra.mxu1 %v3074_v49  ;;  %v1064_v18 = vpack.c.bf16 %v1055_v32, %v1055_v32  ;;  %v1273_v12 = vpack.c.bf16 %v1267_v43, %v1264_v63  ;;  %v1260_v6 = vsub.f32 %v2762_v3, %v1248_v36 }
 0x1e8   : > { %v1257_v56 = vsub.f32 %v2745_v38, %v1245_v50  ;;  %v1259_v27 = vsub.f32 %v2848_v19, %v1247_v4  ;;  %v1251_v3 = vunpack.c.l.bf16 %v2824_v7  ;;  %v1266_v38 = vsub.f32 %v2826_v5, %v1254_v2 }
 0x1e9   : > { %v1034_v14 = vpack.c.bf16 %v1026_v51, %v1026_v51  ;;  %1320 = vmatpush.bf16.msra.mxu2 %v2032_v48  ;;  %v1083_v55 = vunpack.c.l.b16 %v1064_v18  ;;  %v1253_v13 = vunpack.c.l.bf16 %v1064_v18 }
 0x1ea   : > { %v1269_v53 = vpack.c.bf16 %v1260_v6, %v1257_v56  ;;  %v1263_v61 = vsub.f32 %v2806_v28, %v1251_v3 }
 0x1eb   : > { %v1046_v24 = vunpack.c.l.bf16 %v1034_v14  ;;  %v1175_v0 = vunpack.c.l.b16 %v1034_v14  ;;  %v1265_v62 = vsub.f32 %v1055_v32, %v1253_v13 }
 0x1ec   : > { %1215 = vmatmul.bf16.vlgmr.msrb.gmra.mxu2 %v1177_v15  ;;  %1234 = vmatmul.bf16.vlgmr.msrb.gmra.mxu3 %v1178_v16  ;;  %v1272_v44 = vpack.c.bf16 %v1266_v38, %v1263_v61 }
 0x1ed   : > { %v1058_v22 = vsub.f32 %v1026_v51, %v1046_v24  ;;  %1496 = vmatpush.bf16.msrb.mxu2 %v3074_v49  ;;  %1515 = vmatpush.bf16.msrb.mxu3 %v3076_v57  ;;  %v1171_v49 = vunpack.c.h.b16 %v2782_v29  ;;  %v1181_v46 = vpack.c.b16 %v1175_v0, %v1172_v17  ;;  %v1262_v29 = vsub.f32 %v2858_v42, %v1250_v23 }
 0x1ef   : > { %v1066_v37 = vpack.c.bf16 %v1058_v22, %v1058_v22  ;;  %v1180_v35 = vpack.c.b16 %v1174_v10, %v1171_v49  ;;  %v1271_v9 = vpack.c.bf16 %v1262_v29, %v1259_v27 }
 0x1f1   : > { %v1086_v54 = vunpack.c.l.b16 %v1066_v37  ;;  %v1256_v21 = vunpack.c.l.bf16 %v1066_v37 }
 0x1f3   : > { %v1092_v52 = vpack.c.b16 %v1086_v54, %v1083_v55  ;;  %v1268_v42 = vsub.f32 %v1058_v22, %v1256_v21 }
 0x1f5   : > { %1150 = vmatmul.bf16.gmra.mxu0 %v1092_v52  ;;  %v1274_v51 = vpack.c.bf16 %v1268_v42, %v1265_v62 }
 0x1f6   : > { %1307 = vmatmul.bf16.gmra.mxu1 %v1273_v12 }
 0x1fc   : > { %1220 = vmatmul.bf16.gmra.mxu2 %v1180_v35  ;;  %1239 = vmatmul.bf16.gmra.mxu3 %v1181_v46 }
 0x205   : > { %1283 = vmatmul.bf16.vlgmr.msra.gmra.mxu0 %v1269_v53 }
 0x206   : > { %1534 = vmatpush.bf16.msra.mxu0 %v2599_v34 }
 0x20c   : > { %1321 = vmatmul.bf16.vlgmr.msra.gmra.mxu2 %v1271_v9 }
 0x20d   : > { %1588 = vmatpush.bf16.msra.mxu2 %v3076_v57 }
 0x215   : > { %1288 = vmatmul.bf16.gmra.mxu0 %v1272_v44 }
 0x21c   : > { %1326 = vmatmul.bf16.gmra.mxu2 %v1274_v51 }
 0x243   : > { %v1197_v47 = vpop.f32.mrf.mxu1 }
 0x24b   : > { %v1199_v57 = vpop.f32.mrf.mxu1 }
 0x24f   : > { %v1108_v19 = vpop.f32.mrf.mxu2  ;;  %v1127_v14 = vpop.f32.mrf.mxu3 }
 0x250   : > { %v1128_v55 = vadd.f32 %v1127_v14, %v1108_v19 }
 0x253   : > { %v1202_v16 = vpop.f32.mrf.mxu1 }
 0x257   : > { %v1110_v26 = vpop.f32.mrf.mxu2  ;;  %v1129_v5 = vpop.f32.mrf.mxu3 }
 0x258   : > { %v1130_v0 = vadd.f32 %v1129_v5, %v1110_v26 }
 0x25b   : > { %v1204_v22 = vpop.f32.mrf.mxu1 }
 0x25f   : > { %v1113_v31 = vpop.f32.mrf.mxu2  ;;  %v1132_v41 = vpop.f32.mrf.mxu3 }
 0x260   : > { %v1133_v29 = vadd.f32 %v1132_v41, %v1113_v31 }
 0x262   : > { %v1146_v7 = vpop.f32.mrf.mxu0 }
 0x263   : > { %v1147_v43 = vadd.f32 %v1146_v7, %v1128_v55  ;;  %v1303_v52 = vpop.f32.mrf.mxu1 }
 0x265   : > { %v1198_v10 = vadd.f32 %v1197_v47, %v1147_v43 }
 0x267   : > { %v1115_v48 = vpop.f32.mrf.mxu2  ;;  %v1134_v32 = vpop.f32.mrf.mxu3 }
 0x268   : > { %v1135_v19 = vadd.f32 %v1134_v32, %v1115_v48 }
 0x26a   : > { %v1148_v15 = vpop.f32.mrf.mxu0 }
 0x26b   : > { %v1149_v17 = vadd.f32 %v1148_v15, %v1130_v0  ;;  %v1305_v56 = vpop.f32.mrf.mxu1 }
 0x26d   : > { %v1200_v23 = vadd.f32 %v1199_v57, %v1149_v17 }
 0x26f   : > { %v1216_v24 = vpop.f32.mrf.mxu2  ;;  %v1235_v12 = vpop.f32.mrf.mxu3 }
 0x270   : > { %v1217_v49 = vadd.f32 %v1216_v24, %v1198_v10 }
 0x272   : > { %v1151_v28 = vpop.f32.mrf.mxu0  ;;  %v1236_v50 = vadd.f32 %v1235_v12, %v1217_v49 }
 0x273   : > { %v1152_v2 = vadd.f32 %v1151_v28, %v1133_v29  ;;  %v1308_v51 = vpop.f32.mrf.mxu1 }
 0x275   : > { %v1203_v42 = vadd.f32 %v1202_v16, %v1152_v2 }
 0x277   : > { %v1218_v18 = vpop.f32.mrf.mxu2  ;;  %v1237_v4 = vpop.f32.mrf.mxu3 }
 0x278   : > { %v1219_v27 = vadd.f32 %v1218_v18, %v1200_v23 }
 0x27a   : > { %v1153_v37 = vpop.f32.mrf.mxu0  ;;  %v1238_v21 = vadd.f32 %v1237_v4, %v1219_v27 }
 0x27b   : > { %v1154_v57 = vadd.f32 %v1153_v37, %v1135_v19  ;;  %v1310_v48 = vpop.f32.mrf.mxu1 }
 0x27d   : > { %v1205_v55 = vadd.f32 %v1204_v22, %v1154_v57 }
 0x27f   : > { %v1221_v59 = vpop.f32.mrf.mxu2  ;;  %v1240_v14 = vpop.f32.mrf.mxu3 }
 0x280   : > { %v1222_v26 = vadd.f32 %v1221_v59, %v1203_v42 }
 0x282   : > { %v1284_v54 = vpop.f32.mrf.mxu0  ;;  %v1241_v28 = vadd.f32 %v1240_v14, %v1222_v26 }
 0x283   : > { %v1304_v35 = vadd.f32 %v1303_v52, %v1284_v54 }
 0x287   : > { %v1223_v63 = vpop.f32.mrf.mxu2  ;;  %v1242_v0 = vpop.f32.mrf.mxu3 }
 0x288   : > { %v1224_v52 = vadd.f32 %v1223_v63, %v1205_v55 }
 0x28a   : > { %v1286_v36 = vpop.f32.mrf.mxu0 }
 0x28b   : > { %v1306_v3 = vadd.f32 %v1305_v56, %v1286_v36  ;;  %v1243_v36 = vadd.f32 %v1242_v0, %v1224_v52 }
 0x28f   : > { %v1322_v46 = vpop.f32.mrf.mxu2 }
 0x290   : > { %v1323_v6 = vadd.f32 %v1322_v46, %v1304_v35 }
 0x292   : > { %v1332_v53 = vadd.f32 %v1323_v6, %v1236_v50  ;;  %v1289_v13 = vpop.f32.mrf.mxu0 }
 0x293   : > { %v1309_v31 = vadd.f32 %v1308_v51, %v1289_v13 }
 0x294   : > { %v1336_v9 = vmul.f32 0.020833334, %v1332_v53 }
 0x296   : > { %v1340_v38 = vadd.f32 1e-05, %v1336_v9 }
 0x297   : > { %v1324_v61 = vpop.f32.mrf.mxu2 }
 0x298   : > { %2014 = vrsqrt.f32 %v1340_v38  ;;  %v1325_v44 = vadd.f32 %v1324_v61, %v1306_v3  ;;  %vm1350_vm3 = vweird.f32 %v1340_v38 }
 0x29a   : > { %v1333_v62 = vadd.f32 %v1325_v44, %v1238_v21  ;;  %v1291_v16 = vpop.f32.mrf.mxu0 }
 0x29b   : > { %v1311_v10 = vadd.f32 %v1310_v48, %v1291_v16 }
 0x29c   : > { %v1337_v47 = vmul.f32 0.020833334, %v1333_v62 }
 0x29e   : > { %v2015_v7 = vpop.eup %2014  ;;  %v1341_v15 = vadd.f32 1e-05, %v1337_v47 }
 0x29f   : > { %v1345_v5 = vmul.f32 %v2015_v7, %v1340_v38  ;;  %v1327_v24 = vpop.f32.mrf.mxu2  ;;  %vm1351_vm2 = vweird.f32 %v2015_v7 }
 0x2a0   : > { %2016 = vrsqrt.f32 %v1341_v15  ;;  %v1328_v41 = vadd.f32 %v1327_v24, %v1309_v31  ;;  %vm1352_vm4 = vmor %vm1350_vm3, %vm1351_vm2  ;;  %vm1360_vm6 = vweird.f32 %v1341_v15 }
 0x2a1   : > { %v1346_v18 = vmul.f32 %v2015_v7, %v1345_v5 }
 0x2a2   : > { %v1334_v54 = vadd.f32 %v1328_v41, %v1241_v28 }
 0x2a3   : > { %v1347_v43 = vmul.f32 0.5, %v1346_v18 }
 0x2a4   : > { %v1338_v12 = vmul.f32 0.020833334, %v1334_v54 }
 0x2a5   : > { %v1348_v32 = vsub.f32 1.5, %v1347_v43 }
 0x2a6   : > { %v2017_v59 = vpop.eup %2016  ;;  %v1342_v37 = vadd.f32 1e-05, %v1338_v12 }
 0x2a7   : > { %v1349_v49 = vmul.f32 %v2015_v7, %v1348_v32  ;;  %v1355_v17 = vmul.f32 %v2017_v59, %v1341_v15  ;;  %v1329_v35 = vpop.f32.mrf.mxu2  ;;  %vm1361_vm5 = vweird.f32 %v2017_v59 }
 0x2a8   : > { %2018 = vrsqrt.f32 %v1342_v37  ;;  %v1330_v22 = vadd.f32 %v1329_v35, %v1311_v10  ;;  %vm1362_vm7 = vmor %vm1360_vm6, %vm1361_vm5  ;;  %vm1370_vm9 = vweird.f32 %v1342_v37 }
 0x2a9   : > { %v1353_v46 = vsel %vm1352_vm4, %v2015_v7, %v1349_v49  ;;  %v1356_v50 = vmul.f32 %v2017_v59, %v1355_v17 }
 0x2aa   : > { %v1384_v6 = vpack.c.bf16 %v1353_v46, %v1353_v46  ;;  %v1335_v63 = vadd.f32 %v1330_v22, %v1243_v36 }
 0x2ab   : > { %v1357_v56 = vmul.f32 0.5, %v1356_v50 }
 0x2ac   : > { %v1339_v23 = vmul.f32 0.020833334, %v1335_v63  ;;  %v1388_v29 = vunpack.c.l.bf16 %v1384_v6  ;;  %v1477_v13 = vunpack.c.l.b16 %v1384_v6 }
 0x2ad   : > { %v1358_v53 = vsub.f32 1.5, %v1357_v56 }
 0x2ae   : > { %v2019_v4 = vpop.eup %2018  ;;  %v1343_v27 = vadd.f32 1e-05, %v1339_v23  ;;  %v1392_v61 = vsub.f32 %v1353_v46, %v1388_v29 }
 0x2af   : > { %v1359_v9 = vmul.f32 %v2017_v59, %v1358_v53  ;;  %v1365_v2 = vmul.f32 %v2019_v4, %v1342_v37  ;;  %vm1371_vm8 = vweird.f32 %v2019_v4 }
 0x2b0   : > { %2020 = vrsqrt.f32 %v1343_v27  ;;  %v1396_v26 = vpack.c.bf16 %v1392_v61, %v1392_v61  ;;  %vm1372_vm10 = vmor %vm1370_vm9, %vm1371_vm8  ;;  %vm1380_vm12 = vweird.f32 %v1343_v27 }
 0x2b1   : > { %v1363_v3 = vsel %vm1362_vm7, %v2017_v59, %v1359_v9  ;;  %v1366_v38 = vmul.f32 %v2019_v4, %v1365_v2 }
 0x2b2   : > { %v1385_v21 = vpack.c.bf16 %v1363_v3, %v1363_v3  ;;  %v1404_v24 = vunpack.c.l.b16 %v1396_v26 }
 0x2b3   : > { %v1367_v44 = vmul.f32 0.5, %v1366_v38 }
 0x2b4   : > { %v1389_v42 = vunpack.c.l.bf16 %v1385_v21  ;;  %v1478_v62 = vunpack.c.l.b16 %v1385_v21 }
 0x2b5   : > { %v1368_v51 = vsub.f32 1.5, %v1367_v44 }
 0x2b6   : > { %v2021_v19 = vpop.eup %2020  ;;  %v1393_v47 = vsub.f32 %v1363_v3, %v1389_v42  ;;  %v1481_v14 = vpack.c.b16 %v1478_v62, %v1477_v13 }
 0x2b7   : > { %v1369_v7 = vmul.f32 %v2019_v4, %v1368_v51  ;;  %v1375_v57 = vmul.f32 %v2021_v19, %v1343_v27  ;;  %vm1381_vm11 = vweird.f32 %v2021_v19 }
 0x2b8   : > { %v1397_v31 = vpack.c.bf16 %v1393_v47, %v1393_v47  ;;  %1918 = vmatmul.msk.bf16.vlgmr.msrb.gmra.mxu2 %vm771_vm1, %v1481_v14  ;;  %vm1382_vm13 = vmor %vm1380_vm12, %vm1381_vm11 }
 0x2b9   : > { %v1373_v15 = vsel %vm1372_vm10, %v2019_v4, %v1369_v7  ;;  %v1376_v5 = vmul.f32 %v2021_v19, %v1375_v57 }
 0x2ba   : > { %v1405_v28 = vunpack.c.l.b16 %v1397_v31  ;;  %v1386_v41 = vpack.c.bf16 %v1373_v15, %v1373_v15  ;;  %v1547_v46 = vunpack.c.l.bf16 %v1397_v31 }
 0x2bb   : > { %v1377_v18 = vmul.f32 0.5, %v1376_v5 }
 0x2bc   : > { %v1408_v55 = vpack.c.b16 %v1405_v28, %v1404_v24  ;;  %v1390_v43 = vunpack.c.l.bf16 %v1386_v41  ;;  %v1479_v59 = vunpack.c.l.b16 %v1386_v41  ;;  %v1551_v50 = vsub.f32 %v1393_v47, %v1547_v46 }
 0x2bd   : > { %v1378_v54 = vsub.f32 1.5, %v1377_v18 }
 0x2be   : > { %1912 = vmatmul.msk.bf16.vlgmr.msra.gmra.mxu3 %vm771_vm1, %v1408_v55  ;;  %1914 = vmatmul.msk.bf16.vlgmr.msrb.gmra.mxu0 %vm771_vm1, %v1408_v55  ;;  %v1394_v48 = vsub.f32 %v1373_v15, %v1390_v43 }
 0x2bf   : > { %v1379_v16 = vmul.f32 %v2021_v19, %v1378_v54  ;;  %1916 = vmatmul.msk.bf16.vlgmr.msrb.gmra.mxu1 %vm771_vm1, %v1408_v55  ;;  %1607 = vmatpush.bf16.msra.mxu3 %v2599_v34  ;;  %v1546_v34 = vunpack.c.l.bf16 %v1396_v26 }
 0x2c0   : > { %v1398_v49 = vpack.c.bf16 %v1394_v48, %v1394_v48 }
 0x2c1   : > { %v1383_v52 = vsel %vm1382_vm13, %v2021_v19, %v1379_v16  ;;  %v1550_v6 = vsub.f32 %v1392_v61, %v1546_v34  ;;  %v2946_v19 = vld [vmem:[#allocation2] sm:$0x3f] }
 0x2c2   : > { %v1387_v12 = vpack.c.bf16 %v1383_v52, %v1383_v52  ;;  %v1406_v35 = vunpack.c.l.b16 %v1398_v49  ;;  %v1548_v23 = vunpack.c.l.bf16 %v1398_v49  ;;  %v1666_v57 = vperm.slane %v2946_v19, 1 }
 0x2c3   : > { %v1554_v63 = vpack.c.bf16 %v1551_v50, %v1550_v6  ;;  %v1646_v18 = vperm.slane %v2946_v19, 2  ;;  %v1667_v16 = vperm.slane %v2946_v19, 3 }
 0x2c4   : > { %v1391_v32 = vunpack.c.l.bf16 %v1387_v12  ;;  %v1480_v10 = vunpack.c.l.b16 %v1387_v12  ;;  %v1552_v4 = vsub.f32 %v1394_v48, %v1548_v23  ;;  %v1672_v41 = vperm.slane %v1666_v57, 1 }
 0x2c6   : > { %v1482_v37 = vpack.c.b16 %v1480_v10, %v1479_v59  ;;  %v1395_v0 = vsub.f32 %v1383_v52, %v1391_v32  ;;  %v1652_v59 = vperm.slane %v1646_v18, 0 }
 0x2c8   : > { %1919 = vmatmul.msk.bf16.gmra.mxu2 %vm771_vm1, %v1482_v37  ;;  %v1399_v17 = vpack.c.bf16 %v1395_v0, %v1395_v0 }
 0x2ca   : > { %v1407_v36 = vunpack.c.l.b16 %v1399_v17  ;;  %v1549_v56 = vunpack.c.l.bf16 %v1399_v17 }
 0x2cc   : > { %v1409_v22 = vpack.c.b16 %v1407_v36, %v1406_v35  ;;  %v1553_v53 = vsub.f32 %v1395_v0, %v1549_v56  ;;  %v1673_v0 = vperm.slane %v1667_v16, 1 }
 0x2ce   : > { %1913 = vmatmul.msk.bf16.gmra.mxu3 %vm771_vm1, %v1409_v22  ;;  %1915 = vmatmul.msk.bf16.gmra.mxu0 %vm771_vm1, %v1409_v22  ;;  %v1555_v29 = vpack.c.bf16 %v1553_v53, %v1552_v4 }
 0x2cf   : > { %1917 = vmatmul.msk.bf16.gmra.mxu1 %vm771_vm1, %v1409_v22 }
 0x2d8   : > { %1926 = vmatmul.msk.bf16.vlgmr.msra.gmra.mxu2 %vm771_vm1, %v1554_v63 }
 0x2de   : > { %1920 = vmatmul.msk.bf16.vlgmr.msrb.gmra.mxu3 %vm771_vm1, %v1481_v14  ;;  %1922 = vmatmul.msk.bf16.vlgmr.msra.gmra.mxu0 %vm771_vm1, %v1481_v14  ;;  %v1645_v14 = vperm.slane %v2946_v19, 0 }
 0x2df   : > { %1924 = vmatmul.msk.bf16.vlgmr.msra.gmra.mxu1 %vm771_vm1, %v1554_v63 }
 0x2e0   : > { %v1651_v5 = vperm.slane %v1645_v14, 0 }
 0x2e8   : > { %1927 = vmatmul.msk.bf16.gmra.mxu2 %vm771_vm1, %v1555_v29 }
 0x2ee   : > { %1921 = vmatmul.msk.bf16.gmra.mxu3 %vm771_vm1, %v1482_v37  ;;  %1923 = vmatmul.msk.bf16.gmra.mxu0 %vm771_vm1, %v1482_v37 }
 0x2ef   : > { %1925 = vmatmul.msk.bf16.gmra.mxu1 %vm771_vm1, %v1555_v29 }
 0x2fe   : > { %1928 = vmatmul.msk.bf16.vlgmr.msra.gmra.mxu3 %vm771_vm1, %v1554_v63 }
 0x30e   : > { %1929 = vmatmul.msk.bf16.gmra.mxu3 %vm771_vm1, %v1555_v29 }
 0x33b   : > { %v1498_v27 = vpop.f32.mrf.mxu2  ;;  %v1444_v13 = vpop.f32.mrf.mxu0 }
 0x33c   : > { %v2938_v9 = vpop.f32.mrf.mxu1 }
 0x341   : > { %v1425_v2 = vpop.f32.mrf.mxu3 }
 0x342   : > { %v1499_v7 = vadd.f32 %v1498_v27, %v1425_v2 }
 0x343   : > { %v1500_v3 = vpop.f32.mrf.mxu2  ;;  %v1446_v26 = vpop.f32.mrf.mxu0 }
 0x344   : > { %v2940_v38 = vpop.f32.mrf.mxu1 }
 0x349   : > { %v1427_v61 = vpop.f32.mrf.mxu3 }
 0x34a   : > { %v1501_v52 = vadd.f32 %v1500_v3, %v1427_v61 }
 0x34b   : > { %v1503_v21 = vpop.f32.mrf.mxu2  ;;  %v1449_v12 = vpop.f32.mrf.mxu0 }
 0x34c   : > { %v2942_v44 = vpop.f32.mrf.mxu1 }
 0x351   : > { %v1430_v42 = vpop.f32.mrf.mxu3 }
 0x352   : > { %v1504_v50 = vadd.f32 %v1503_v21, %v1430_v42 }
 0x353   : > { %v1505_v62 = vpop.f32.mrf.mxu2  ;;  %v1451_v23 = vpop.f32.mrf.mxu0 }
 0x354   : > { %v2944_v51 = vpop.f32.mrf.mxu1 }
 0x359   : > { %v1432_v47 = vpop.f32.mrf.mxu3 }
 0x35a   : > { %v1506_v21 = vadd.f32 %v1505_v62, %v1432_v47 }
 0x35b   : > { %v1590_v24 = vpop.f32.mrf.mxu2 }
 0x35c   : > { %v1571_v31 = vpop.f32.mrf.mxu1 }
 0x35d   : > { %v1619_v15 = vadd.f32 %v1571_v31, %v1499_v7 }
 0x35f   : > { %v1632_v28 = vmul.f32 %v1619_v15, %v2725_v45 }
 0x361   : > { %v1654_v55 = vmul.f32 %v1651_v5, %v1632_v28  ;;  %v1517_v54 = vpop.f32.mrf.mxu3 }
 0x362   : > { %v1518_v43 = vadd.f32 %v1517_v54, %v1444_v13  ;;  %v1647_v54 = vperm.slane %v2946_v19, 4 }
 0x363   : > { %v1675_v48 = vadd.f32 %v1672_v41, %v1654_v55  ;;  %v1592_v17 = vpop.f32.mrf.mxu2 }
 0x364   : > { %v1620_v32 = vadd.f32 %v1590_v24, %v1518_v43  ;;  %v1573_v10 = vpop.f32.mrf.mxu1 }
 0x365   : > { %1687 = vst [vmem:[%s2956_s20] sm:$0xff] %v1675_v48  ;;  %v1622_v45 = vadd.f32 %v1573_v10, %v1501_v52  ;;  %v1653_v48 = vperm.slane %v1647_v54, 0 }
 0x366   : > { %v1633_v37 = vmul.f32 %v1620_v32, %v2722_v40 }
 0x367   : > { %v1635_v49 = vmul.f32 %v1622_v45, %v2739_v11 }
 0x368   : > { %v1655_v35 = vmul.f32 %v1652_v59, %v1633_v37 }
 0x369   : > { %v1657_v36 = vmul.f32 %v1651_v5, %v1635_v49  ;;  %v1519_v22 = vpop.f32.mrf.mxu3 }
 0x36a   : > { %v1676_v46 = vadd.f32 %v1673_v0, %v1655_v35  ;;  %v1520_v34 = vadd.f32 %v1519_v22, %v1446_v26 }
 0x36b   : > { %v1678_v6 = vadd.f32 %v1672_v41, %v1657_v36  ;;  %v1595_v27 = vpop.f32.mrf.mxu2 }
 0x36c   : > { %1688 = vst [vmem:[%s2956_s20 + $0x8] sm:$0xff] %v1676_v46  ;;  %v1623_v63 = vadd.f32 %v1592_v17, %v1520_v34  ;;  %v1576_v56 = vpop.f32.mrf.mxu1 }
 0x36d   : > { %1690 = vst [vmem:[%s2956_s20 + $0x18] sm:$0xff] %v1678_v6  ;;  %v1625_v53 = vadd.f32 %v1576_v56, %v1504_v50 }
 0x36e   : > { %v1636_v40 = vmul.f32 %v1623_v63, %v2734_v58  ;;  %v1536_v58 = vpop.f32.mrf.mxu0 }
 0x36f   : > { %v1638_v11 = vmul.f32 %v1625_v53, %v2767_v8 }
 0x370   : > { %v1658_v4 = vmul.f32 %v1652_v59, %v1636_v40 }
 0x371   : > { %v1660_v29 = vmul.f32 %v1651_v5, %v1638_v11  ;;  %v1522_v2 = vpop.f32.mrf.mxu3 }
 0x372   : > { %v1679_v3 = vadd.f32 %v1673_v0, %v1658_v4  ;;  %v1523_v61 = vadd.f32 %v1522_v2, %v1449_v12 }
 0x373   : > { %v1681_v13 = vadd.f32 %v1672_v41, %v1660_v29  ;;  %v1597_v47 = vpop.f32.mrf.mxu2 }
 0x374   : > { %1691 = vst [vmem:[%s2956_s20 + $0x20] sm:$0xff] %v1679_v3  ;;  %v1626_v42 = vadd.f32 %v1595_v27, %v1523_v61  ;;  %v1578_v26 = vpop.f32.mrf.mxu1 }
 0x375   : > { %1693 = vst [vmem:[%s2956_s20 + $0x30] sm:$0xff] %v1681_v13  ;;  %v1628_v14 = vadd.f32 %v1578_v26, %v1506_v21 }
 0x376   : > { %v1639_v7 = vmul.f32 %v1626_v42, %v2755_v25  ;;  %v1537_v25 = vadd.f32 %v1536_v58, %v2938_v9 }
 0x377   : > { %v1641_v8 = vmul.f32 %v1628_v14, %v2791_v1  ;;  %v1668_v1 = vperm.slane %v2946_v19, 5 }
 0x378   : > { %v1661_v57 = vmul.f32 %v1652_v59, %v1639_v7 }
 0x379   : > { %v1663_v31 = vmul.f32 %v1651_v5, %v1641_v8  ;;  %v1524_v15 = vpop.f32.mrf.mxu3  ;;  %v1538_v5 = vpop.f32.mrf.mxu0  ;;  %v1674_v32 = vperm.slane %v1668_v1, 1 }
 0x37a   : > { %v1682_v24 = vadd.f32 %v1673_v0, %v1661_v57  ;;  %v1525_v28 = vadd.f32 %v1524_v15, %v1451_v23 }
 0x37b   : > { %v1684_v62 = vadd.f32 %v1672_v41, %v1663_v31 }
 0x37c   : > { %1694 = vst [vmem:[%s2956_s20 + $0x38] sm:$0xff] %v1682_v24  ;;  %v1629_v18 = vadd.f32 %v1597_v47, %v1525_v28 }
 0x37d   : > { %1696 = vst [vmem:[%s2956_s20 + $0x48] sm:$0xff] %v1684_v62 }
 0x37e   : > { %v1642_v55 = vmul.f32 %v1629_v18, %v2786_v20  ;;  %v1539_v20 = vadd.f32 %v1538_v5, %v2940_v38 }
 0x380   : > { %v1664_v43 = vmul.f32 %v1652_v59, %v1642_v55 }
 0x381   : > { %v1609_v16 = vpop.f32.mrf.mxu3  ;;  %v1541_v19 = vpop.f32.mrf.mxu0 }
 0x382   : > { %v1685_v52 = vadd.f32 %v1673_v0, %v1664_v43  ;;  %v1621_v12 = vadd.f32 %v1609_v16, %v1537_v25  ;;  %v1542_v49 = vadd.f32 %v1541_v19, %v2942_v44 }
 0x384   : > { %1697 = vst [vmem:[%s2956_s20 + $0x50] sm:$0xff] %v1685_v52  ;;  %v1634_v41 = vmul.f32 %v1621_v12, %v2794_v33 }
 0x386   : > { %v1656_v10 = vmul.f32 %v1653_v48, %v1634_v41 }
 0x388   : > { %v1677_v45 = vadd.f32 %v1674_v32, %v1656_v10 }
 0x389   : > { %v1611_v37 = vpop.f32.mrf.mxu3  ;;  %v1543_v38 = vpop.f32.mrf.mxu0 }
 0x38a   : > { %1689 = vst [vmem:[%s2956_s20 + $0x10] sm:$0xff] %v1677_v45  ;;  %v1624_v9 = vadd.f32 %v1611_v37, %v1539_v20  ;;  %v1544_v46 = vadd.f32 %v1543_v38, %v2944_v51 }
 0x38c   : > { %v1637_v59 = vmul.f32 %v1624_v9, %v2832_v39 }
 0x38e   : > { %v1659_v0 = vmul.f32 %v1653_v48, %v1637_v59 }
 0x390   : > { %v1680_v17 = vadd.f32 %v1674_v32, %v1659_v0 }
 0x391   : > { %v1614_v35 = vpop.f32.mrf.mxu3 }
 0x392   : > { %1692 = vst [vmem:[%s2956_s20 + $0x28] sm:$0xff] %v1680_v17  ;;  %v1627_v33 = vadd.f32 %v1614_v35, %v1542_v49 }
 0x394   : > { %v1640_v36 = vmul.f32 %v1627_v33, %v2861_v60 }
 0x396   : > { %v1662_v22 = vmul.f32 %v1653_v48, %v1640_v36 }
 0x398   : > { %v1683_v34 = vadd.f32 %v1674_v32, %v1662_v22 }
 0x399   : > { %v1616_v50 = vpop.f32.mrf.mxu3 }
 0x39a   : > { %1695 = vst [vmem:[%s2956_s20 + $0x40] sm:$0xff] %v1683_v34  ;;  %v1630_v39 = vadd.f32 %v1616_v50, %v1544_v46 }
 0x39c   : > { %v1643_v44 = vmul.f32 %v1630_v39, %v2882_v30 }
 0x39e   : > { %v1665_v60 = vmul.f32 %v1653_v48, %v1643_v44 }
 0x3a0   : > { %v1686_v6 = vadd.f32 %v1674_v32, %v1665_v60 }
 0x3a2   : > { %1698 = vst [vmem:[%s2956_s20 + $0x58] sm:$0xff] %v1686_v6 }
 0x3a3   : > { %2090 = shalt.err (!%p2087_p8)
}
 0x3a4   : > { %s2132_s12 = smov 384   ;;  %s2133_s13 = smov 24  }
 0x3a5   : > { %1966 = dma.vmem_to_hbm [thread:$0]  (%p2197_p5), %s1714_s29, 1536, %s1716_s30, %s1700_s19, %s2132_s12, %s2132_s12, %s2133_s13  }
 0x3a6 PF: > { %p1978_p9 = scmp.ge.s32.totalorder %s2129_s18, 2  ;;  %s1730_s14 = sand.u32 1, %s2117_s15  }
 0x3a7   : > { %s1731_s20 = scalar_lea.sflag [#allocation4], %s1730_s14 }
 0x3a8   : > { %p1973_p10 = pnand %p1978_p9, %p2201_p6 }
 0x3aa   : > { %p1974_p11 = pneg %p1973_p10 }
 0x3ac   : > { %2112 = dma.done.wait (%p1974_p11), %s1731_s20, 1536  }
 0x3ad   : > { %2114 = vsyncadd (%p1974_p11), %s1731_s20, 4294965760  ;;  %p15_p12 = scmp.ge.s32.totalorder %s2184_s21, 4   ;;  %s3077_s15 = smov %s2121_s16 }
 0x3ae   : > { %s3078_s16 = smov %s2125_s17  ;;  %s3079_s17 = smov %s2195_s24 }
 0x3af   : > { %s3080_s18 = smov %s2184_s21  ;;  %17 = sbr.rel (!%p15_p12) target bundleno = 4 (0x4), region = 76 }
 0x3b4   :  { %1737 = vsyncpa [#allocation3], 1 }
 0x3b5   :  { %1739 = vsyncpa [#allocation3 + $0x1], 1 }
 0x3b6   :  { %1740 = vsyncpa [#allocation4], 1 }
 0x3b7   :  { %1742 = vsyncpa [#allocation4 + $0x1], 1 }

</bundles_post_ra>
